<compile_context>
chip_gen: v5e
topology: v5e:2x2
jax: 0.10.0
libtpu: 0.0.40
codegen_flags: <defaults>
</compile_context>

<pallas_src>
import functools

import jax
import jax.numpy as jnp
import numpy as np
from jax import lax
from jax.experimental import pallas as pl
from jax.experimental.pallas import tpu as pltpu


# ----------------------------- module config --------------------------------
INPUT_CHANNELS = 4
OUTPUT_CHANNELS = 32
NUM_CONV_LAYERS = 2
INTERMEDIATE_CONV_DIM = 8
KERNEL_SIZE = 3
STRIDE = 1
PADDING = 1
POOLING_KERNEL_SIZE = 3
POOLING_STRIDE = 2
POOLING_PADDING = 1
USE_RELU = True          # activation=nn.ReLU
MAX_POOL = True
CONV_BIAS = False        # conv bias disabled

# Each stage's activation is stored once, dense, at lane offset LANE_PAD inside a
# scratch row of width LANE_PAD + H*W + LANE_PAD.  Taps read the same rows at lane
# offset LANE_PAD + d (d = dh*W + dw).  The slack lanes are never zeroed; every
# out-of-image position is masked in-register instead (no fills at all).
LANE_PAD = 128


# --------------------------- in-kernel helpers --------------------------------
def _coords(hw, width):
    """Planar (h, w) coordinates of every flattened spatial position, shape (1, hw)."""
    col = lax.broadcasted_iota(jnp.int32, (1, hw), 1)
    if width & (width - 1) == 0:                 # power of two (16 / 8 here)
        return col >> (width.bit_length() - 1), col & (width - 1)
    return col // width, col % width


def _tap_mask(h, w, height, width, dh, dw):
    """Validity mask (or None) for tap (dh, dw): True where (h+dh, w+dw) is in-image."""
    conds = []
    if dh > 0:
        conds.append(h < height - dh)
    if dh < 0:
        conds.append(h >= -dh)
    if dw > 0:
        conds.append(w < width - dw)
    if dw < 0:
        conds.append(w >= -dw)
    if not conds:
        return None
    m = conds[0]
    for c in conds[1:]:
        m = m & c
    return m


def _shifted(ref, hw, d):
    """Activation shifted by d flat positions (slack lanes hold garbage; callers mask)."""
    return ref[:, LANE_PAD + d:LANE_PAD + d + hw]


def _conv3x3(src_ref, taps_ref, h, w, height, width, hw):
    """3x3 / stride-1 / pad-1 conv (+ReLU): 9 per-tap MXU dots into a dense (C_out, hw) acc."""
    acc = None
    for kh in range(KERNEL_SIZE):
        for kw in range(KERNEL_SIZE):
            dh, dw = kh - PADDING, kw - PADDING
            op = _shifted(src_ref, hw, dh * width + dw)
            m = _tap_mask(h, w, height, width, dh, dw)
            if m is not None:
                op = jnp.where(m, op, 0.0)          # zero padding semantics
            term = jnp.dot(taps_ref[kh * KERNEL_SIZE + kw], op,
                           preferred_element_type=jnp.float32)
            acc = term if acc is None else acc + term
    return jnp.maximum(acc, 0.0) if USE_RELU else acc


def _pool3x3_fullres_max(src_ref, h, w, height, width, hw):
    """Full-resolution 3x3 window max.  OOB taps contribute 0.0, which is exact for
    MaxPool2d's -inf padding because the input is post-ReLU (>= 0)."""
    out = None
    for di in (-1, 0, 1):
        for dj in (-1, 0, 1):
            v = _shifted(src_ref, hw, di * width + dj)
            m = _tap_mask(h, w, height, width, di, dj)
            if m is not None:
                v = jnp.where(m, v, 0.0)
            out = v if out is None else jnp.maximum(out, v)
    return out


# --------------------------------- kernel ------------------------------------
def _tokenizer_kernel(x_ref, w1t_ref, w2t_ref, s1_ref, s2t_ref, o_ref,
                      a1, b1, a2, b2, *, bt, c2, height, width, pooled):
    """conv1+ReLU+pool1+conv2+ReLU+pool2 for `bt` images (batch rides the sublanes)."""
    hw1 = height * width               # 256
    hw2 = pooled * pooled              # 64

    h1, w1 = _coords(hw1, width)
    h2, w2 = _coords(hw2, pooled)

    # ---- stage 1: conv(C0 -> C1) + ReLU + maxpool 3/2/1 ----
    a1[:, LANE_PAD:LANE_PAD + hw1] = x_ref[...].astype(jnp.float32)
    act1 = _conv3x3(a1, w1t_ref, h1, w1, height, width, hw1)        # (bt*C1, hw1)
    b1[:, LANE_PAD:LANE_PAD + hw1] = act1
    m1 = _pool3x3_fullres_max(b1, h1, w1, height, width, hw1)       # (bt*C1, hw1)
    pooled1 = jnp.dot(m1, s1_ref[...],
                      preferred_element_type=jnp.float32)           # (bt*C1, hw2)

    # ---- stage 2: conv(C1 -> C2) + ReLU + maxpool 3/2/1 ----
    a2[:, LANE_PAD:LANE_PAD + hw2] = pooled1
    act2 = _conv3x3(a2, w2t_ref, h2, w2, pooled, pooled, hw2)       # (bt*C2, hw2)
    b2[:, LANE_PAD:LANE_PAD + hw2] = act2
    m2 = _pool3x3_fullres_max(b2, h2, w2, pooled, pooled, hw2)      # (bt*C2, hw2)

    # stride-2 downsample fused with the (seq, channel) transpose: one dot_general
    # contracting the last dims of both operands (the "A @ B^T" MXU pattern).
    out_t = lax.dot_general(s2t_ref[...], m2,
                            dimension_numbers=(((1,), (1,)), ((), ())),
                            preferred_element_type=jnp.float32)     # (seq, bt*C2)
    for b in range(bt):
        o_ref[b, :, :] = out_t[:, b * c2:(b + 1) * c2].astype(o_ref.dtype)


# -------------------------------- wrapper -------------------------------------
def _pool_center_select(height, width):
    """(H*W, Hp*Wp) 0/1 matrix selecting the stride-2 window centers.  Exact for the
    symmetric 3x3 / stride-2 / pad-1 pool (output (ph, pw) window is centered on
    input (2ph, 2pw)), so pooling = full-res 3x3 max followed by this selection."""
    hp = (height + 2 * POOLING_PADDING - POOLING_KERNEL_SIZE) // POOLING_STRIDE + 1
    wp = (width + 2 * POOLING_PADDING - POOLING_KERNEL_SIZE) // POOLING_STRIDE + 1
    s = np.zeros((height * width, hp * wp), np.float32)
    for ph in range(hp):
        for pw in range(wp):
            s[POOLING_STRIDE * ph * width + POOLING_STRIDE * pw, ph * wp + pw] = 1.0
    return jnp.asarray(s)


def conv_tokenizer_forward(x_nchw, weights, *, images_per_step=None):
    """ConvTokenizer forward. Input NCHW (PyTorch convention), output (B, seq, C_out)."""
    assert KERNEL_SIZE == 3 and STRIDE == 1 and PADDING == 1
    assert POOLING_KERNEL_SIZE == 3 and POOLING_STRIDE == 2 and POOLING_PADDING == 1
    w1, w2 = weights                                    # HWIO (3, 3, C_in, C_out)
    B, C0, H, W = x_nchw.shape
    C1, C2 = w1.shape[-1], w2.shape[-1]

    pool_out = lambda n: (n + 2 * POOLING_PADDING - POOLING_KERNEL_SIZE) // POOLING_STRIDE + 1
    P1 = pool_out(H)          # conv is shape-preserving (k=3, s=1, p=1)
    P2 = pool_out(P1)
    SEQ = P2 * P2

    if images_per_step is None:
        # Keep >= 2 grid steps so v7x's two TensorCores both get work, while folding
        # B//2 images per step to amortize fixed per-step overhead on v5e/v6e.
        images_per_step = max(1, B // 2)
    bt = images_per_step
    assert B % bt == 0
    steps = B // bt

    # Per-tap (C_out, C_in) weight matrices, block-diagonal over the bt images that
    # share one grid step (the batch rides the sublane axis of every operand).
    eye_bt = jnp.eye(bt, dtype=jnp.float32)

    def tap_mats(w):
        mats = [jnp.kron(eye_bt, w[kh, kw].T.astype(jnp.float32))
                for kh in range(KERNEL_SIZE) for kw in range(KERNEL_SIZE)]
        return jnp.stack(mats)                          # (9, bt*C_out, bt*C_in)

    w1t, w2t = tap_mats(w1), tap_mats(w2)

    s1 = _pool_center_select(H, W)                      # (H*W, P1*P1)
    s2t = _pool_center_select(P1, P1).T                 # (SEQ, P1*P1): pre-transposed so the
                                                        # final matmul emits (seq, C) directly
    # NCHW batch -> (steps, bt*C0, H*W): pure row-major reshape (no transpose, no pad).
    x_flat = x_nchw.reshape(steps, bt * C0, H * W)

    kernel = functools.partial(_tokenizer_kernel, bt=bt, c2=C2,
                               height=H, width=W, pooled=P1)
    pad_w1 = LANE_PAD + H * W + LANE_PAD
    pad_w2 = LANE_PAD + P1 * P1 + LANE_PAD

    out = pl.pallas_call(
        kernel,
        out_shape=jax.ShapeDtypeStruct((B, SEQ, C2), x_nchw.dtype),
        grid=(steps,),
        in_specs=[
            pl.BlockSpec((None, bt * C0, H * W), lambda g: (g, 0, 0)),
            pl.BlockSpec(w1t.shape, lambda g: (0, 0, 0)),   # revisited block: loaded once
            pl.BlockSpec(w2t.shape, lambda g: (0, 0, 0)),
            pl.BlockSpec(s1.shape, lambda g: (0, 0)),
            pl.BlockSpec(s2t.shape, lambda g: (0, 0)),
        ],
        out_specs=pl.BlockSpec((bt, SEQ, C2), lambda g: (g, 0, 0)),
        scratch_shapes=[
            pltpu.VMEM((bt * C0, pad_w1), jnp.float32),   # conv1 input
            pltpu.VMEM((bt * C1, pad_w1), jnp.float32),   # conv1 output / pool1 input
            pltpu.VMEM((bt * C1, pad_w2), jnp.float32),   # conv2 input
            pltpu.VMEM((bt * C2, pad_w2), jnp.float32),   # conv2 output / pool2 input
        ],
        compiler_params=pltpu.CompilerParams(
            dimension_semantics=("parallel",)),           # batch steps -> 2 TCs on v7x
    )(x_flat, w1t, w2t, s1, s2t)

    # (B, Hq2*Wq2, C2) == x.flatten(2).transpose(1, 2) of the NCHW conv-stack output.
    return out


def init_conv_tokenizer_params(key):
    """Kaiming-normal conv weights (fan_in mode, gain sqrt(2)); HWIO layout; no bias."""
    channels = ([INPUT_CHANNELS]
                + [INTERMEDIATE_CONV_DIM] * (NUM_CONV_LAYERS - 1)
                + [OUTPUT_CHANNELS])
    weights = []
    for cin, cout in zip(channels[:-1], channels[1:]):
        key, sub = jax.random.split(key)
        fan_in = cin * KERNEL_SIZE * KERNEL_SIZE
        std = (2.0 / fan_in) ** 0.5
        w = std * jax.random.normal(sub, (KERNEL_SIZE, KERNEL_SIZE, cin, cout),
                                    dtype=jnp.float32)
        weights.append(w)
    return weights


# ------------------------------ reference ------------------------------------
def _reference_forward(x_nchw, weights):
    x = jnp.transpose(x_nchw, (0, 2, 3, 1))
    for w in weights:
        x = lax.conv_general_dilated(
            x, w, window_strides=(STRIDE, STRIDE),
            padding=[(PADDING, PADDING), (PADDING, PADDING)],
            dimension_numbers=("NHWC", "HWIO", "NHWC"))
        if USE_RELU:
            x = jnp.maximum(x, 0.0)
        if MAX_POOL:
            x = lax.reduce_window(
                x, -jnp.inf, lax.max,
                window_dimensions=(1, POOLING_KERNEL_SIZE, POOLING_KERNEL_SIZE, 1),
                window_strides=(1, POOLING_STRIDE, POOLING_STRIDE, 1),
                padding=[(0, 0), (POOLING_PADDING, POOLING_PADDING),
                         (POOLING_PADDING, POOLING_PADDING), (0, 0)])
    B, H, W, C = x.shape
    return x.reshape(B, H * W, C)


# --------------------------------- main --------------------------------------
if __name__ == "__main__":
    key = jax.random.PRNGKey(0)
    key, xkey = jax.random.split(key)
    x = jax.random.normal(xkey, (2, INPUT_CHANNELS, 16, 16), dtype=jnp.float32)

    weights = init_conv_tokenizer_params(key)

    fwd = jax.jit(conv_tokenizer_forward)
    out = jax.block_until_ready(fwd(x, weights))

    ref = jax.block_until_ready(_reference_forward(x, weights))
    assert out.shape == (2, 16, OUTPUT_CHANNELS), out.shape
    assert jnp.allclose(out, ref, atol=1e-4, rtol=1e-4), "mismatch vs JAX reference"

    print("KERNEL_OK")
</pallas_src>

<mosaic_0001>
module attributes {stable_mosaic.version = 11 : i64} {
  func.func @_tokenizer_kernel(%arg0: i32, %arg1: memref<1x4x256xf32, #tpu.memory_space<vmem>>, %arg2: memref<9x8x4xf32, #tpu.memory_space<vmem>>, %arg3: memref<9x32x8xf32, #tpu.memory_space<vmem>>, %arg4: memref<256x64xf32, #tpu.memory_space<vmem>>, %arg5: memref<16x64xf32, #tpu.memory_space<vmem>>, %arg6: memref<1x16x32xf32, #tpu.memory_space<vmem>>, %arg7: memref<4x512xf32, #tpu.memory_space<vmem>>, %arg8: memref<8x512xf32, #tpu.memory_space<vmem>>, %arg9: memref<8x320xf32, #tpu.memory_space<vmem>>, %arg10: memref<32x320xf32, #tpu.memory_space<vmem>>) attributes {dimension_semantics = [#tpu.dimension_semantics<parallel>], iteration_bounds = array<i64: 2>, scalar_prefetch = 0 : i64, scratch_operands = 4 : i64, tpu.core_type = #tpu.core_type<tc>, window_params = [{transform_indices = @transform_0, window_bounds = array<i64: 1, 4, 256>}, {pipeline_mode = #tpu.pipeline_mode<synchronous>, transform_indices = @transform_1, window_bounds = array<i64: 9, 8, 4>}, {pipeline_mode = #tpu.pipeline_mode<synchronous>, transform_indices = @transform_2, window_bounds = array<i64: 9, 32, 8>}, {pipeline_mode = #tpu.pipeline_mode<synchronous>, transform_indices = @transform_3, window_bounds = array<i64: 256, 64>}, {pipeline_mode = #tpu.pipeline_mode<synchronous>, transform_indices = @transform_4, window_bounds = array<i64: 16, 64>}, {transform_indices = @transform_5, window_bounds = array<i64: 1, 16, 32>}]} {
    %0 = tpu.iota {dimensions = array<i32: 1>} : vector<1x256xi32>
    %c4_i32 = arith.constant 4 : i32
    %1 = vector.broadcast %c4_i32 : i32 to vector<1x256xi32>
    %2 = arith.shrsi %0, %1 : vector<1x256xi32>
    %c15_i32 = arith.constant 15 : i32
    %3 = vector.broadcast %c15_i32 : i32 to vector<1x256xi32>
    %4 = arith.andi %0, %3 : vector<1x256xi32>
    %5 = tpu.iota {dimensions = array<i32: 1>} : vector<1x64xi32>
    %c3_i32 = arith.constant 3 : i32
    %6 = vector.broadcast %c3_i32 : i32 to vector<1x64xi32>
    %7 = arith.shrsi %5, %6 : vector<1x64xi32>
    %c7_i32 = arith.constant 7 : i32
    %8 = vector.broadcast %c7_i32 : i32 to vector<1x64xi32>
    %9 = arith.andi %5, %8 : vector<1x64xi32>
    %c0 = arith.constant 0 : index
    %c0_0 = arith.constant 0 : index
    %c0_1 = arith.constant 0 : index
    %10 = vector.load %arg1[%c0, %c0_0, %c0_1] : memref<1x4x256xf32, #tpu.memory_space<vmem>>, vector<1x4x256xf32>
    %11 = vector.shape_cast %10 : vector<1x4x256xf32> to vector<4x256xf32>
    %c0_2 = arith.constant 0 : index
    %c128 = arith.constant 128 : index
    %12 = vector.load %arg7[%c0_2, %c128] : memref<4x512xf32, #tpu.memory_space<vmem>>, vector<4x256xf32>
    tpu.vector_store %arg7[%c0_2, %c128], %11 {strides = array<i32>} : memref<4x512xf32, #tpu.memory_space<vmem>>, vector<4x256xf32>,
    %c0_3 = arith.constant 0 : index
    %c111 = arith.constant 111 : index
    %13 = vector.load %arg7[%c0_3, %c111] : memref<4x512xf32, #tpu.memory_space<vmem>>, vector<4x256xf32>
    %c1_i32 = arith.constant 1 : i32
    %14 = vector.broadcast %c1_i32 : i32 to vector<1x256xi32>
    %15 = arith.cmpi sge, %2, %14 : vector<1x256xi32>
    %c1_i32_4 = arith.constant 1 : i32
    %16 = vector.broadcast %c1_i32_4 : i32 to vector<1x256xi32>
    %17 = arith.cmpi sge, %4, %16 : vector<1x256xi32>
    %18 = arith.andi %15, %17 : vector<1x256xi1>
    %cst = arith.constant 0.000000e+00 : f32
    %19 = vector.shape_cast %18 : vector<1x256xi1> to vector<1x256xi1>
    %20 = vector.broadcast %19 : vector<1x256xi1> to vector<4x256xi1>
    %21 = vector.broadcast %cst : f32 to vector<4x256xf32>
    %22 = arith.select %20, %13, %21 : vector<4x256xi1>, vector<4x256xf32>
    %c0_5 = arith.constant 0 : index
    %c0_6 = arith.constant 0 : index
    %c0_7 = arith.constant 0 : index
    %23 = vector.load %arg2[%c0_5, %c0_6, %c0_7] : memref<9x8x4xf32, #tpu.memory_space<vmem>>, vector<1x8x4xf32>
    %24 = vector.shape_cast %23 : vector<1x8x4xf32> to vector<8x4xf32>
    %cst_8 = arith.constant dense<0.000000e+00> : vector<8x256xf32>
    %25 = tpu.matmul %24, %22, %cst_8 {dimension_numbers = #tpu.dot_dimension_numbers<[1], [0], [0], [1], [0, 0, 1, 1], [], []>} : vector<8x4xf32>, vector<4x256xf32>, vector<8x256xf32> -> vector<8x256xf32>
    %c0_9 = arith.constant 0 : index
    %c112 = arith.constant 112 : index
    %26 = vector.load %arg7[%c0_9, %c112] : memref<4x512xf32, #tpu.memory_space<vmem>>, vector<4x256xf32>
    %c1_i32_10 = arith.constant 1 : i32
    %27 = vector.broadcast %c1_i32_10 : i32 to vector<1x256xi32>
    %28 = arith.cmpi sge, %2, %27 : vector<1x256xi32>
    %cst_11 = arith.constant 0.000000e+00 : f32
    %29 = vector.shape_cast %28 : vector<1x256xi1> to vector<1x256xi1>
    %30 = vector.broadcast %29 : vector<1x256xi1> to vector<4x256xi1>
    %31 = vector.broadcast %cst_11 : f32 to vector<4x256xf32>
    %32 = arith.select %30, %26, %31 : vector<4x256xi1>, vector<4x256xf32>
    %c1 = arith.constant 1 : index
    %c0_12 = arith.constant 0 : index
    %c0_13 = arith.constant 0 : index
    %33 = vector.load %arg2[%c1, %c0_12, %c0_13] : memref<9x8x4xf32, #tpu.memory_space<vmem>>, vector<1x8x4xf32>
    %34 = vector.shape_cast %33 : vector<1x8x4xf32> to vector<8x4xf32>
    %cst_14 = arith.constant dense<0.000000e+00> : vector<8x256xf32>
    %35 = tpu.matmul %34, %32, %cst_14 {dimension_numbers = #tpu.dot_dimension_numbers<[1], [0], [0], [1], [0, 0, 1, 1], [], []>} : vector<8x4xf32>, vector<4x256xf32>, vector<8x256xf32> -> vector<8x256xf32>
    %36 = arith.addf %25, %35 : vector<8x256xf32>
    %c0_15 = arith.constant 0 : index
    %c113 = arith.constant 113 : index
    %37 = vector.load %arg7[%c0_15, %c113] : memref<4x512xf32, #tpu.memory_space<vmem>>, vector<4x256xf32>
    %c1_i32_16 = arith.constant 1 : i32
    %38 = vector.broadcast %c1_i32_16 : i32 to vector<1x256xi32>
    %39 = arith.cmpi sge, %2, %38 : vector<1x256xi32>
    %c15_i32_17 = arith.constant 15 : i32
    %40 = vector.broadcast %c15_i32_17 : i32 to vector<1x256xi32>
    %41 = arith.cmpi slt, %4, %40 : vector<1x256xi32>
    %42 = arith.andi %39, %41 : vector<1x256xi1>
    %cst_18 = arith.constant 0.000000e+00 : f32
    %43 = vector.shape_cast %42 : vector<1x256xi1> to vector<1x256xi1>
    %44 = vector.broadcast %43 : vector<1x256xi1> to vector<4x256xi1>
    %45 = vector.broadcast %cst_18 : f32 to vector<4x256xf32>
    %46 = arith.select %44, %37, %45 : vector<4x256xi1>, vector<4x256xf32>
    %c2 = arith.constant 2 : index
    %c0_19 = arith.constant 0 : index
    %c0_20 = arith.constant 0 : index
    %47 = vector.load %arg2[%c2, %c0_19, %c0_20] : memref<9x8x4xf32, #tpu.memory_space<vmem>>, vector<1x8x4xf32>
    %48 = vector.shape_cast %47 : vector<1x8x4xf32> to vector<8x4xf32>
    %cst_21 = arith.constant dense<0.000000e+00> : vector<8x256xf32>
    %49 = tpu.matmul %48, %46, %cst_21 {dimension_numbers = #tpu.dot_dimension_numbers<[1], [0], [0], [1], [0, 0, 1, 1], [], []>} : vector<8x4xf32>, vector<4x256xf32>, vector<8x256xf32> -> vector<8x256xf32>
    %50 = arith.addf %36, %49 : vector<8x256xf32>
    %c0_22 = arith.constant 0 : index
    %c127 = arith.constant 127 : index
    %51 = vector.load %arg7[%c0_22, %c127] : memref<4x512xf32, #tpu.memory_space<vmem>>, vector<4x256xf32>
    %c1_i32_23 = arith.constant 1 : i32
    %52 = vector.broadcast %c1_i32_23 : i32 to vector<1x256xi32>
    %53 = arith.cmpi sge, %4, %52 : vector<1x256xi32>
    %cst_24 = arith.constant 0.000000e+00 : f32
    %54 = vector.shape_cast %53 : vector<1x256xi1> to vector<1x256xi1>
    %55 = vector.broadcast %54 : vector<1x256xi1> to vector<4x256xi1>
    %56 = vector.broadcast %cst_24 : f32 to vector<4x256xf32>
    %57 = arith.select %55, %51, %56 : vector<4x256xi1>, vector<4x256xf32>
    %c3 = arith.constant 3 : index
    %c0_25 = arith.constant 0 : index
    %c0_26 = arith.constant 0 : index
    %58 = vector.load %arg2[%c3, %c0_25, %c0_26] : memref<9x8x4xf32, #tpu.memory_space<vmem>>, vector<1x8x4xf32>
    %59 = vector.shape_cast %58 : vector<1x8x4xf32> to vector<8x4xf32>
    %cst_27 = arith.constant dense<0.000000e+00> : vector<8x256xf32>
    %60 = tpu.matmul %59, %57, %cst_27 {dimension_numbers = #tpu.dot_dimension_numbers<[1], [0], [0], [1], [0, 0, 1, 1], [], []>} : vector<8x4xf32>, vector<4x256xf32>, vector<8x256xf32> -> vector<8x256xf32>
    %61 = arith.addf %50, %60 : vector<8x256xf32>
    %c0_28 = arith.constant 0 : index
    %c128_29 = arith.constant 128 : index
    %62 = vector.load %arg7[%c0_28, %c128_29] : memref<4x512xf32, #tpu.memory_space<vmem>>, vector<4x256xf32>
    %c4 = arith.constant 4 : index
    %c0_30 = arith.constant 0 : index
    %c0_31 = arith.constant 0 : index
    %63 = vector.load %arg2[%c4, %c0_30, %c0_31] : memref<9x8x4xf32, #tpu.memory_space<vmem>>, vector<1x8x4xf32>
    %64 = vector.shape_cast %63 : vector<1x8x4xf32> to vector<8x4xf32>
    %cst_32 = arith.constant dense<0.000000e+00> : vector<8x256xf32>
    %65 = tpu.matmul %64, %62, %cst_32 {dimension_numbers = #tpu.dot_dimension_numbers<[1], [0], [0], [1], [0, 0, 1, 1], [], []>} : vector<8x4xf32>, vector<4x256xf32>, vector<8x256xf32> -> vector<8x256xf32>
    %66 = arith.addf %61, %65 : vector<8x256xf32>
    %c0_33 = arith.constant 0 : index
    %c129 = arith.constant 129 : index
    %67 = vector.load %arg7[%c0_33, %c129] : memref<4x512xf32, #tpu.memory_space<vmem>>, vector<4x256xf32>
    %c15_i32_34 = arith.constant 15 : i32
    %68 = vector.broadcast %c15_i32_34 : i32 to vector<1x256xi32>
    %69 = arith.cmpi slt, %4, %68 : vector<1x256xi32>
    %cst_35 = arith.constant 0.000000e+00 : f32
    %70 = vector.shape_cast %69 : vector<1x256xi1> to vector<1x256xi1>
    %71 = vector.broadcast %70 : vector<1x256xi1> to vector<4x256xi1>
    %72 = vector.broadcast %cst_35 : f32 to vector<4x256xf32>
    %73 = arith.select %71, %67, %72 : vector<4x256xi1>, vector<4x256xf32>
    %c5 = arith.constant 5 : index
    %c0_36 = arith.constant 0 : index
    %c0_37 = arith.constant 0 : index
    %74 = vector.load %arg2[%c5, %c0_36, %c0_37] : memref<9x8x4xf32, #tpu.memory_space<vmem>>, vector<1x8x4xf32>
    %75 = vector.shape_cast %74 : vector<1x8x4xf32> to vector<8x4xf32>
    %cst_38 = arith.constant dense<0.000000e+00> : vector<8x256xf32>
    %76 = tpu.matmul %75, %73, %cst_38 {dimension_numbers = #tpu.dot_dimension_numbers<[1], [0], [0], [1], [0, 0, 1, 1], [], []>} : vector<8x4xf32>, vector<4x256xf32>, vector<8x256xf32> -> vector<8x256xf32>
    %77 = arith.addf %66, %76 : vector<8x256xf32>
    %c0_39 = arith.constant 0 : index
    %c143 = arith.constant 143 : index
    %78 = vector.load %arg7[%c0_39, %c143] : memref<4x512xf32, #tpu.memory_space<vmem>>, vector<4x256xf32>
    %c15_i32_40 = arith.constant 15 : i32
    %79 = vector.broadcast %c15_i32_40 : i32 to vector<1x256xi32>
    %80 = arith.cmpi slt, %2, %79 : vector<1x256xi32>
    %c1_i32_41 = arith.constant 1 : i32
    %81 = vector.broadcast %c1_i32_41 : i32 to vector<1x256xi32>
    %82 = arith.cmpi sge, %4, %81 : vector<1x256xi32>
    %83 = arith.andi %80, %82 : vector<1x256xi1>
    %cst_42 = arith.constant 0.000000e+00 : f32
    %84 = vector.shape_cast %83 : vector<1x256xi1> to vector<1x256xi1>
    %85 = vector.broadcast %84 : vector<1x256xi1> to vector<4x256xi1>
    %86 = vector.broadcast %cst_42 : f32 to vector<4x256xf32>
    %87 = arith.select %85, %78, %86 : vector<4x256xi1>, vector<4x256xf32>
    %c6 = arith.constant 6 : index
    %c0_43 = arith.constant 0 : index
    %c0_44 = arith.constant 0 : index
    %88 = vector.load %arg2[%c6, %c0_43, %c0_44] : memref<9x8x4xf32, #tpu.memory_space<vmem>>, vector<1x8x4xf32>
    %89 = vector.shape_cast %88 : vector<1x8x4xf32> to vector<8x4xf32>
    %cst_45 = arith.constant dense<0.000000e+00> : vector<8x256xf32>
    %90 = tpu.matmul %89, %87, %cst_45 {dimension_numbers = #tpu.dot_dimension_numbers<[1], [0], [0], [1], [0, 0, 1, 1], [], []>} : vector<8x4xf32>, vector<4x256xf32>, vector<8x256xf32> -> vector<8x256xf32>
    %91 = arith.addf %77, %90 : vector<8x256xf32>
    %c0_46 = arith.constant 0 : index
    %c144 = arith.constant 144 : index
    %92 = vector.load %arg7[%c0_46, %c144] : memref<4x512xf32, #tpu.memory_space<vmem>>, vector<4x256xf32>
    %c15_i32_47 = arith.constant 15 : i32
    %93 = vector.broadcast %c15_i32_47 : i32 to vector<1x256xi32>
    %94 = arith.cmpi slt, %2, %93 : vector<1x256xi32>
    %cst_48 = arith.constant 0.000000e+00 : f32
    %95 = vector.shape_cast %94 : vector<1x256xi1> to vector<1x256xi1>
    %96 = vector.broadcast %95 : vector<1x256xi1> to vector<4x256xi1>
    %97 = vector.broadcast %cst_48 : f32 to vector<4x256xf32>
    %98 = arith.select %96, %92, %97 : vector<4x256xi1>, vector<4x256xf32>
    %c7 = arith.constant 7 : index
    %c0_49 = arith.constant 0 : index
    %c0_50 = arith.constant 0 : index
    %99 = vector.load %arg2[%c7, %c0_49, %c0_50] : memref<9x8x4xf32, #tpu.memory_space<vmem>>, vector<1x8x4xf32>
    %100 = vector.shape_cast %99 : vector<1x8x4xf32> to vector<8x4xf32>
    %cst_51 = arith.constant dense<0.000000e+00> : vector<8x256xf32>
    %101 = tpu.matmul %100, %98, %cst_51 {dimension_numbers = #tpu.dot_dimension_numbers<[1], [0], [0], [1], [0, 0, 1, 1], [], []>} : vector<8x4xf32>, vector<4x256xf32>, vector<8x256xf32> -> vector<8x256xf32>
    %102 = arith.addf %91, %101 : vector<8x256xf32>
    %c0_52 = arith.constant 0 : index
    %c145 = arith.constant 145 : index
    %103 = vector.load %arg7[%c0_52, %c145] : memref<4x512xf32, #tpu.memory_space<vmem>>, vector<4x256xf32>
    %c15_i32_53 = arith.constant 15 : i32
    %104 = vector.broadcast %c15_i32_53 : i32 to vector<1x256xi32>
    %105 = arith.cmpi slt, %2, %104 : vector<1x256xi32>
    %c15_i32_54 = arith.constant 15 : i32
    %106 = vector.broadcast %c15_i32_54 : i32 to vector<1x256xi32>
    %107 = arith.cmpi slt, %4, %106 : vector<1x256xi32>
    %108 = arith.andi %105, %107 : vector<1x256xi1>
    %cst_55 = arith.constant 0.000000e+00 : f32
    %109 = vector.shape_cast %108 : vector<1x256xi1> to vector<1x256xi1>
    %110 = vector.broadcast %109 : vector<1x256xi1> to vector<4x256xi1>
    %111 = vector.broadcast %cst_55 : f32 to vector<4x256xf32>
    %112 = arith.select %110, %103, %111 : vector<4x256xi1>, vector<4x256xf32>
    %c8 = arith.constant 8 : index
    %c0_56 = arith.constant 0 : index
    %c0_57 = arith.constant 0 : index
    %113 = vector.load %arg2[%c8, %c0_56, %c0_57] : memref<9x8x4xf32, #tpu.memory_space<vmem>>, vector<1x8x4xf32>
    %114 = vector.shape_cast %113 : vector<1x8x4xf32> to vector<8x4xf32>
    %cst_58 = arith.constant dense<0.000000e+00> : vector<8x256xf32>
    %115 = tpu.matmul %114, %112, %cst_58 {dimension_numbers = #tpu.dot_dimension_numbers<[1], [0], [0], [1], [0, 0, 1, 1], [], []>} : vector<8x4xf32>, vector<4x256xf32>, vector<8x256xf32> -> vector<8x256xf32>
    %116 = arith.addf %102, %115 : vector<8x256xf32>
    %cst_59 = arith.constant 0.000000e+00 : f32
    %117 = vector.broadcast %cst_59 : f32 to vector<8x256xf32>
    %118 = arith.maximumf %116, %117 : vector<8x256xf32>
    %c0_60 = arith.constant 0 : index
    %c128_61 = arith.constant 128 : index
    %119 = vector.load %arg8[%c0_60, %c128_61] : memref<8x512xf32, #tpu.memory_space<vmem>>, vector<8x256xf32>
    tpu.vector_store %arg8[%c0_60, %c128_61], %118 {strides = array<i32>} : memref<8x512xf32, #tpu.memory_space<vmem>>, vector<8x256xf32>,
    %c0_62 = arith.constant 0 : index
    %c111_63 = arith.constant 111 : index
    %120 = vector.load %arg8[%c0_62, %c111_63] : memref<8x512xf32, #tpu.memory_space<vmem>>, vector<8x256xf32>
    %c1_i32_64 = arith.constant 1 : i32
    %121 = vector.broadcast %c1_i32_64 : i32 to vector<1x256xi32>
    %122 = arith.cmpi sge, %2, %121 : vector<1x256xi32>
    %c1_i32_65 = arith.constant 1 : i32
    %123 = vector.broadcast %c1_i32_65 : i32 to vector<1x256xi32>
    %124 = arith.cmpi sge, %4, %123 : vector<1x256xi32>
    %125 = arith.andi %122, %124 : vector<1x256xi1>
    %cst_66 = arith.constant 0.000000e+00 : f32
    %126 = vector.shape_cast %125 : vector<1x256xi1> to vector<1x256xi1>
    %127 = vector.broadcast %126 : vector<1x256xi1> to vector<8x256xi1>
    %128 = vector.broadcast %cst_66 : f32 to vector<8x256xf32>
    %129 = arith.select %127, %120, %128 : vector<8x256xi1>, vector<8x256xf32>
    %c0_67 = arith.constant 0 : index
    %c112_68 = arith.constant 112 : index
    %130 = vector.load %arg8[%c0_67, %c112_68] : memref<8x512xf32, #tpu.memory_space<vmem>>, vector<8x256xf32>
    %c1_i32_69 = arith.constant 1 : i32
    %131 = vector.broadcast %c1_i32_69 : i32 to vector<1x256xi32>
    %132 = arith.cmpi sge, %2, %131 : vector<1x256xi32>
    %cst_70 = arith.constant 0.000000e+00 : f32
    %133 = vector.shape_cast %132 : vector<1x256xi1> to vector<1x256xi1>
    %134 = vector.broadcast %133 : vector<1x256xi1> to vector<8x256xi1>
    %135 = vector.broadcast %cst_70 : f32 to vector<8x256xf32>
    %136 = arith.select %134, %130, %135 : vector<8x256xi1>, vector<8x256xf32>
    %137 = arith.maximumf %129, %136 : vector<8x256xf32>
    %c0_71 = arith.constant 0 : index
    %c113_72 = arith.constant 113 : index
    %138 = vector.load %arg8[%c0_71, %c113_72] : memref<8x512xf32, #tpu.memory_space<vmem>>, vector<8x256xf32>
    %c1_i32_73 = arith.constant 1 : i32
    %139 = vector.broadcast %c1_i32_73 : i32 to vector<1x256xi32>
    %140 = arith.cmpi sge, %2, %139 : vector<1x256xi32>
    %c15_i32_74 = arith.constant 15 : i32
    %141 = vector.broadcast %c15_i32_74 : i32 to vector<1x256xi32>
    %142 = arith.cmpi slt, %4, %141 : vector<1x256xi32>
    %143 = arith.andi %140, %142 : vector<1x256xi1>
    %cst_75 = arith.constant 0.000000e+00 : f32
    %144 = vector.shape_cast %143 : vector<1x256xi1> to vector<1x256xi1>
    %145 = vector.broadcast %144 : vector<1x256xi1> to vector<8x256xi1>
    %146 = vector.broadcast %cst_75 : f32 to vector<8x256xf32>
    %147 = arith.select %145, %138, %146 : vector<8x256xi1>, vector<8x256xf32>
    %148 = arith.maximumf %137, %147 : vector<8x256xf32>
    %c0_76 = arith.constant 0 : index
    %c127_77 = arith.constant 127 : index
    %149 = vector.load %arg8[%c0_76, %c127_77] : memref<8x512xf32, #tpu.memory_space<vmem>>, vector<8x256xf32>
    %c1_i32_78 = arith.constant 1 : i32
    %150 = vector.broadcast %c1_i32_78 : i32 to vector<1x256xi32>
    %151 = arith.cmpi sge, %4, %150 : vector<1x256xi32>
    %cst_79 = arith.constant 0.000000e+00 : f32
    %152 = vector.shape_cast %151 : vector<1x256xi1> to vector<1x256xi1>
    %153 = vector.broadcast %152 : vector<1x256xi1> to vector<8x256xi1>
    %154 = vector.broadcast %cst_79 : f32 to vector<8x256xf32>
    %155 = arith.select %153, %149, %154 : vector<8x256xi1>, vector<8x256xf32>
    %156 = arith.maximumf %148, %155 : vector<8x256xf32>
    %c0_80 = arith.constant 0 : index
    %c128_81 = arith.constant 128 : index
    %157 = vector.load %arg8[%c0_80, %c128_81] : memref<8x512xf32, #tpu.memory_space<vmem>>, vector<8x256xf32>
    %158 = arith.maximumf %156, %157 : vector<8x256xf32>
    %c0_82 = arith.constant 0 : index
    %c129_83 = arith.constant 129 : index
    %159 = vector.load %arg8[%c0_82, %c129_83] : memref<8x512xf32, #tpu.memory_space<vmem>>, vector<8x256xf32>
    %c15_i32_84 = arith.constant 15 : i32
    %160 = vector.broadcast %c15_i32_84 : i32 to vector<1x256xi32>
    %161 = arith.cmpi slt, %4, %160 : vector<1x256xi32>
    %cst_85 = arith.constant 0.000000e+00 : f32
    %162 = vector.shape_cast %161 : vector<1x256xi1> to vector<1x256xi1>
    %163 = vector.broadcast %162 : vector<1x256xi1> to vector<8x256xi1>
    %164 = vector.broadcast %cst_85 : f32 to vector<8x256xf32>
    %165 = arith.select %163, %159, %164 : vector<8x256xi1>, vector<8x256xf32>
    %166 = arith.maximumf %158, %165 : vector<8x256xf32>
    %c0_86 = arith.constant 0 : index
    %c143_87 = arith.constant 143 : index
    %167 = vector.load %arg8[%c0_86, %c143_87] : memref<8x512xf32, #tpu.memory_space<vmem>>, vector<8x256xf32>
    %c15_i32_88 = arith.constant 15 : i32
    %168 = vector.broadcast %c15_i32_88 : i32 to vector<1x256xi32>
    %169 = arith.cmpi slt, %2, %168 : vector<1x256xi32>
    %c1_i32_89 = arith.constant 1 : i32
    %170 = vector.broadcast %c1_i32_89 : i32 to vector<1x256xi32>
    %171 = arith.cmpi sge, %4, %170 : vector<1x256xi32>
    %172 = arith.andi %169, %171 : vector<1x256xi1>
    %cst_90 = arith.constant 0.000000e+00 : f32
    %173 = vector.shape_cast %172 : vector<1x256xi1> to vector<1x256xi1>
    %174 = vector.broadcast %173 : vector<1x256xi1> to vector<8x256xi1>
    %175 = vector.broadcast %cst_90 : f32 to vector<8x256xf32>
    %176 = arith.select %174, %167, %175 : vector<8x256xi1>, vector<8x256xf32>
    %177 = arith.maximumf %166, %176 : vector<8x256xf32>
    %c0_91 = arith.constant 0 : index
    %c144_92 = arith.constant 144 : index
    %178 = vector.load %arg8[%c0_91, %c144_92] : memref<8x512xf32, #tpu.memory_space<vmem>>, vector<8x256xf32>
    %c15_i32_93 = arith.constant 15 : i32
    %179 = vector.broadcast %c15_i32_93 : i32 to vector<1x256xi32>
    %180 = arith.cmpi slt, %2, %179 : vector<1x256xi32>
    %cst_94 = arith.constant 0.000000e+00 : f32
    %181 = vector.shape_cast %180 : vector<1x256xi1> to vector<1x256xi1>
    %182 = vector.broadcast %181 : vector<1x256xi1> to vector<8x256xi1>
    %183 = vector.broadcast %cst_94 : f32 to vector<8x256xf32>
    %184 = arith.select %182, %178, %183 : vector<8x256xi1>, vector<8x256xf32>
    %185 = arith.maximumf %177, %184 : vector<8x256xf32>
    %c0_95 = arith.constant 0 : index
    %c145_96 = arith.constant 145 : index
    %186 = vector.load %arg8[%c0_95, %c145_96] : memref<8x512xf32, #tpu.memory_space<vmem>>, vector<8x256xf32>
    %c15_i32_97 = arith.constant 15 : i32
    %187 = vector.broadcast %c15_i32_97 : i32 to vector<1x256xi32>
    %188 = arith.cmpi slt, %2, %187 : vector<1x256xi32>
    %c15_i32_98 = arith.constant 15 : i32
    %189 = vector.broadcast %c15_i32_98 : i32 to vector<1x256xi32>
    %190 = arith.cmpi slt, %4, %189 : vector<1x256xi32>
    %191 = arith.andi %188, %190 : vector<1x256xi1>
    %cst_99 = arith.constant 0.000000e+00 : f32
    %192 = vector.shape_cast %191 : vector<1x256xi1> to vector<1x256xi1>
    %193 = vector.broadcast %192 : vector<1x256xi1> to vector<8x256xi1>
    %194 = vector.broadcast %cst_99 : f32 to vector<8x256xf32>
    %195 = arith.select %193, %186, %194 : vector<8x256xi1>, vector<8x256xf32>
    %196 = arith.maximumf %185, %195 : vector<8x256xf32>
    %c0_100 = arith.constant 0 : index
    %c0_101 = arith.constant 0 : index
    %197 = vector.load %arg4[%c0_100, %c0_101] : memref<256x64xf32, #tpu.memory_space<vmem>>, vector<256x64xf32>
    %cst_102 = arith.constant dense<0.000000e+00> : vector<8x64xf32>
    %198 = tpu.matmul %196, %197, %cst_102 {dimension_numbers = #tpu.dot_dimension_numbers<[1], [0], [0], [1], [0, 0, 1, 1], [], []>} : vector<8x256xf32>, vector<256x64xf32>, vector<8x64xf32> -> vector<8x64xf32>
    %c0_103 = arith.constant 0 : index
    %c128_104 = arith.constant 128 : index
    %199 = vector.load %arg9[%c0_103, %c128_104] : memref<8x320xf32, #tpu.memory_space<vmem>>, vector<8x64xf32>
    tpu.vector_store %arg9[%c0_103, %c128_104], %198 {strides = array<i32>} : memref<8x320xf32, #tpu.memory_space<vmem>>, vector<8x64xf32>,
    %c0_105 = arith.constant 0 : index
    %c119 = arith.constant 119 : index
    %200 = vector.load %arg9[%c0_105, %c119] : memref<8x320xf32, #tpu.memory_space<vmem>>, vector<8x64xf32>
    %c1_i32_106 = arith.constant 1 : i32
    %201 = vector.broadcast %c1_i32_106 : i32 to vector<1x64xi32>
    %202 = arith.cmpi sge, %7, %201 : vector<1x64xi32>
    %c1_i32_107 = arith.constant 1 : i32
    %203 = vector.broadcast %c1_i32_107 : i32 to vector<1x64xi32>
    %204 = arith.cmpi sge, %9, %203 : vector<1x64xi32>
    %205 = arith.andi %202, %204 : vector<1x64xi1>
    %cst_108 = arith.constant 0.000000e+00 : f32
    %206 = vector.shape_cast %205 : vector<1x64xi1> to vector<1x64xi1>
    %207 = vector.broadcast %206 : vector<1x64xi1> to vector<8x64xi1>
    %208 = vector.broadcast %cst_108 : f32 to vector<8x64xf32>
    %209 = arith.select %207, %200, %208 : vector<8x64xi1>, vector<8x64xf32>
    %c0_109 = arith.constant 0 : index
    %c0_110 = arith.constant 0 : index
    %c0_111 = arith.constant 0 : index
    %210 = vector.load %arg3[%c0_109, %c0_110, %c0_111] : memref<9x32x8xf32, #tpu.memory_space<vmem>>, vector<1x32x8xf32>
    %211 = vector.shape_cast %210 : vector<1x32x8xf32> to vector<32x8xf32>
    %cst_112 = arith.constant dense<0.000000e+00> : vector<32x64xf32>
    %212 = tpu.matmul %211, %209, %cst_112 {dimension_numbers = #tpu.dot_dimension_numbers<[1], [0], [0], [1], [0, 0, 1, 1], [], []>} : vector<32x8xf32>, vector<8x64xf32>, vector<32x64xf32> -> vector<32x64xf32>
    %c0_113 = arith.constant 0 : index
    %c120 = arith.constant 120 : index
    %213 = vector.load %arg9[%c0_113, %c120] : memref<8x320xf32, #tpu.memory_space<vmem>>, vector<8x64xf32>
    %c1_i32_114 = arith.constant 1 : i32
    %214 = vector.broadcast %c1_i32_114 : i32 to vector<1x64xi32>
    %215 = arith.cmpi sge, %7, %214 : vector<1x64xi32>
    %cst_115 = arith.constant 0.000000e+00 : f32
    %216 = vector.shape_cast %215 : vector<1x64xi1> to vector<1x64xi1>
    %217 = vector.broadcast %216 : vector<1x64xi1> to vector<8x64xi1>
    %218 = vector.broadcast %cst_115 : f32 to vector<8x64xf32>
    %219 = arith.select %217, %213, %218 : vector<8x64xi1>, vector<8x64xf32>
    %c1_116 = arith.constant 1 : index
    %c0_117 = arith.constant 0 : index
    %c0_118 = arith.constant 0 : index
    %220 = vector.load %arg3[%c1_116, %c0_117, %c0_118] : memref<9x32x8xf32, #tpu.memory_space<vmem>>, vector<1x32x8xf32>
    %221 = vector.shape_cast %220 : vector<1x32x8xf32> to vector<32x8xf32>
    %cst_119 = arith.constant dense<0.000000e+00> : vector<32x64xf32>
    %222 = tpu.matmul %221, %219, %cst_119 {dimension_numbers = #tpu.dot_dimension_numbers<[1], [0], [0], [1], [0, 0, 1, 1], [], []>} : vector<32x8xf32>, vector<8x64xf32>, vector<32x64xf32> -> vector<32x64xf32>
    %223 = arith.addf %212, %222 : vector<32x64xf32>
    %c0_120 = arith.constant 0 : index
    %c121 = arith.constant 121 : index
    %224 = vector.load %arg9[%c0_120, %c121] : memref<8x320xf32, #tpu.memory_space<vmem>>, vector<8x64xf32>
    %c1_i32_121 = arith.constant 1 : i32
    %225 = vector.broadcast %c1_i32_121 : i32 to vector<1x64xi32>
    %226 = arith.cmpi sge, %7, %225 : vector<1x64xi32>
    %c7_i32_122 = arith.constant 7 : i32
    %227 = vector.broadcast %c7_i32_122 : i32 to vector<1x64xi32>
    %228 = arith.cmpi slt, %9, %227 : vector<1x64xi32>
    %229 = arith.andi %226, %228 : vector<1x64xi1>
    %cst_123 = arith.constant 0.000000e+00 : f32
    %230 = vector.shape_cast %229 : vector<1x64xi1> to vector<1x64xi1>
    %231 = vector.broadcast %230 : vector<1x64xi1> to vector<8x64xi1>
    %232 = vector.broadcast %cst_123 : f32 to vector<8x64xf32>
    %233 = arith.select %231, %224, %232 : vector<8x64xi1>, vector<8x64xf32>
    %c2_124 = arith.constant 2 : index
    %c0_125 = arith.constant 0 : index
    %c0_126 = arith.constant 0 : index
    %234 = vector.load %arg3[%c2_124, %c0_125, %c0_126] : memref<9x32x8xf32, #tpu.memory_space<vmem>>, vector<1x32x8xf32>
    %235 = vector.shape_cast %234 : vector<1x32x8xf32> to vector<32x8xf32>
    %cst_127 = arith.constant dense<0.000000e+00> : vector<32x64xf32>
    %236 = tpu.matmul %235, %233, %cst_127 {dimension_numbers = #tpu.dot_dimension_numbers<[1], [0], [0], [1], [0, 0, 1, 1], [], []>} : vector<32x8xf32>, vector<8x64xf32>, vector<32x64xf32> -> vector<32x64xf32>
    %237 = arith.addf %223, %236 : vector<32x64xf32>
    %c0_128 = arith.constant 0 : index
    %c127_129 = arith.constant 127 : index
    %238 = vector.load %arg9[%c0_128, %c127_129] : memref<8x320xf32, #tpu.memory_space<vmem>>, vector<8x64xf32>
    %c1_i32_130 = arith.constant 1 : i32
    %239 = vector.broadcast %c1_i32_130 : i32 to vector<1x64xi32>
    %240 = arith.cmpi sge, %9, %239 : vector<1x64xi32>
    %cst_131 = arith.constant 0.000000e+00 : f32
    %241 = vector.shape_cast %240 : vector<1x64xi1> to vector<1x64xi1>
    %242 = vector.broadcast %241 : vector<1x64xi1> to vector<8x64xi1>
    %243 = vector.broadcast %cst_131 : f32 to vector<8x64xf32>
    %244 = arith.select %242, %238, %243 : vector<8x64xi1>, vector<8x64xf32>
    %c3_132 = arith.constant 3 : index
    %c0_133 = arith.constant 0 : index
    %c0_134 = arith.constant 0 : index
    %245 = vector.load %arg3[%c3_132, %c0_133, %c0_134] : memref<9x32x8xf32, #tpu.memory_space<vmem>>, vector<1x32x8xf32>
    %246 = vector.shape_cast %245 : vector<1x32x8xf32> to vector<32x8xf32>
    %cst_135 = arith.constant dense<0.000000e+00> : vector<32x64xf32>
    %247 = tpu.matmul %246, %244, %cst_135 {dimension_numbers = #tpu.dot_dimension_numbers<[1], [0], [0], [1], [0, 0, 1, 1], [], []>} : vector<32x8xf32>, vector<8x64xf32>, vector<32x64xf32> -> vector<32x64xf32>
    %248 = arith.addf %237, %247 : vector<32x64xf32>
    %c0_136 = arith.constant 0 : index
    %c128_137 = arith.constant 128 : index
    %249 = vector.load %arg9[%c0_136, %c128_137] : memref<8x320xf32, #tpu.memory_space<vmem>>, vector<8x64xf32>
    %c4_138 = arith.constant 4 : index
    %c0_139 = arith.constant 0 : index
    %c0_140 = arith.constant 0 : index
    %250 = vector.load %arg3[%c4_138, %c0_139, %c0_140] : memref<9x32x8xf32, #tpu.memory_space<vmem>>, vector<1x32x8xf32>
    %251 = vector.shape_cast %250 : vector<1x32x8xf32> to vector<32x8xf32>
    %cst_141 = arith.constant dense<0.000000e+00> : vector<32x64xf32>
    %252 = tpu.matmul %251, %249, %cst_141 {dimension_numbers = #tpu.dot_dimension_numbers<[1], [0], [0], [1], [0, 0, 1, 1], [], []>} : vector<32x8xf32>, vector<8x64xf32>, vector<32x64xf32> -> vector<32x64xf32>
    %253 = arith.addf %248, %252 : vector<32x64xf32>
    %c0_142 = arith.constant 0 : index
    %c129_143 = arith.constant 129 : index
    %254 = vector.load %arg9[%c0_142, %c129_143] : memref<8x320xf32, #tpu.memory_space<vmem>>, vector<8x64xf32>
    %c7_i32_144 = arith.constant 7 : i32
    %255 = vector.broadcast %c7_i32_144 : i32 to vector<1x64xi32>
    %256 = arith.cmpi slt, %9, %255 : vector<1x64xi32>
    %cst_145 = arith.constant 0.000000e+00 : f32
    %257 = vector.shape_cast %256 : vector<1x64xi1> to vector<1x64xi1>
    %258 = vector.broadcast %257 : vector<1x64xi1> to vector<8x64xi1>
    %259 = vector.broadcast %cst_145 : f32 to vector<8x64xf32>
    %260 = arith.select %258, %254, %259 : vector<8x64xi1>, vector<8x64xf32>
    %c5_146 = arith.constant 5 : index
    %c0_147 = arith.constant 0 : index
    %c0_148 = arith.constant 0 : index
    %261 = vector.load %arg3[%c5_146, %c0_147, %c0_148] : memref<9x32x8xf32, #tpu.memory_space<vmem>>, vector<1x32x8xf32>
    %262 = vector.shape_cast %261 : vector<1x32x8xf32> to vector<32x8xf32>
    %cst_149 = arith.constant dense<0.000000e+00> : vector<32x64xf32>
    %263 = tpu.matmul %262, %260, %cst_149 {dimension_numbers = #tpu.dot_dimension_numbers<[1], [0], [0], [1], [0, 0, 1, 1], [], []>} : vector<32x8xf32>, vector<8x64xf32>, vector<32x64xf32> -> vector<32x64xf32>
    %264 = arith.addf %253, %263 : vector<32x64xf32>
    %c0_150 = arith.constant 0 : index
    %c135 = arith.constant 135 : index
    %265 = vector.load %arg9[%c0_150, %c135] : memref<8x320xf32, #tpu.memory_space<vmem>>, vector<8x64xf32>
    %c7_i32_151 = arith.constant 7 : i32
    %266 = vector.broadcast %c7_i32_151 : i32 to vector<1x64xi32>
    %267 = arith.cmpi slt, %7, %266 : vector<1x64xi32>
    %c1_i32_152 = arith.constant 1 : i32
    %268 = vector.broadcast %c1_i32_152 : i32 to vector<1x64xi32>
    %269 = arith.cmpi sge, %9, %268 : vector<1x64xi32>
    %270 = arith.andi %267, %269 : vector<1x64xi1>
    %cst_153 = arith.constant 0.000000e+00 : f32
    %271 = vector.shape_cast %270 : vector<1x64xi1> to vector<1x64xi1>
    %272 = vector.broadcast %271 : vector<1x64xi1> to vector<8x64xi1>
    %273 = vector.broadcast %cst_153 : f32 to vector<8x64xf32>
    %274 = arith.select %272, %265, %273 : vector<8x64xi1>, vector<8x64xf32>
    %c6_154 = arith.constant 6 : index
    %c0_155 = arith.constant 0 : index
    %c0_156 = arith.constant 0 : index
    %275 = vector.load %arg3[%c6_154, %c0_155, %c0_156] : memref<9x32x8xf32, #tpu.memory_space<vmem>>, vector<1x32x8xf32>
    %276 = vector.shape_cast %275 : vector<1x32x8xf32> to vector<32x8xf32>
    %cst_157 = arith.constant dense<0.000000e+00> : vector<32x64xf32>
    %277 = tpu.matmul %276, %274, %cst_157 {dimension_numbers = #tpu.dot_dimension_numbers<[1], [0], [0], [1], [0, 0, 1, 1], [], []>} : vector<32x8xf32>, vector<8x64xf32>, vector<32x64xf32> -> vector<32x64xf32>
    %278 = arith.addf %264, %277 : vector<32x64xf32>
    %c0_158 = arith.constant 0 : index
    %c136 = arith.constant 136 : index
    %279 = vector.load %arg9[%c0_158, %c136] : memref<8x320xf32, #tpu.memory_space<vmem>>, vector<8x64xf32>
    %c7_i32_159 = arith.constant 7 : i32
    %280 = vector.broadcast %c7_i32_159 : i32 to vector<1x64xi32>
    %281 = arith.cmpi slt, %7, %280 : vector<1x64xi32>
    %cst_160 = arith.constant 0.000000e+00 : f32
    %282 = vector.shape_cast %281 : vector<1x64xi1> to vector<1x64xi1>
    %283 = vector.broadcast %282 : vector<1x64xi1> to vector<8x64xi1>
    %284 = vector.broadcast %cst_160 : f32 to vector<8x64xf32>
    %285 = arith.select %283, %279, %284 : vector<8x64xi1>, vector<8x64xf32>
    %c7_161 = arith.constant 7 : index
    %c0_162 = arith.constant 0 : index
    %c0_163 = arith.constant 0 : index
    %286 = vector.load %arg3[%c7_161, %c0_162, %c0_163] : memref<9x32x8xf32, #tpu.memory_space<vmem>>, vector<1x32x8xf32>
    %287 = vector.shape_cast %286 : vector<1x32x8xf32> to vector<32x8xf32>
    %cst_164 = arith.constant dense<0.000000e+00> : vector<32x64xf32>
    %288 = tpu.matmul %287, %285, %cst_164 {dimension_numbers = #tpu.dot_dimension_numbers<[1], [0], [0], [1], [0, 0, 1, 1], [], []>} : vector<32x8xf32>, vector<8x64xf32>, vector<32x64xf32> -> vector<32x64xf32>
    %289 = arith.addf %278, %288 : vector<32x64xf32>
    %c0_165 = arith.constant 0 : index
    %c137 = arith.constant 137 : index
    %290 = vector.load %arg9[%c0_165, %c137] : memref<8x320xf32, #tpu.memory_space<vmem>>, vector<8x64xf32>
    %c7_i32_166 = arith.constant 7 : i32
    %291 = vector.broadcast %c7_i32_166 : i32 to vector<1x64xi32>
    %292 = arith.cmpi slt, %7, %291 : vector<1x64xi32>
    %c7_i32_167 = arith.constant 7 : i32
    %293 = vector.broadcast %c7_i32_167 : i32 to vector<1x64xi32>
    %294 = arith.cmpi slt, %9, %293 : vector<1x64xi32>
    %295 = arith.andi %292, %294 : vector<1x64xi1>
    %cst_168 = arith.constant 0.000000e+00 : f32
    %296 = vector.shape_cast %295 : vector<1x64xi1> to vector<1x64xi1>
    %297 = vector.broadcast %296 : vector<1x64xi1> to vector<8x64xi1>
    %298 = vector.broadcast %cst_168 : f32 to vector<8x64xf32>
    %299 = arith.select %297, %290, %298 : vector<8x64xi1>, vector<8x64xf32>
    %c8_169 = arith.constant 8 : index
    %c0_170 = arith.constant 0 : index
    %c0_171 = arith.constant 0 : index
    %300 = vector.load %arg3[%c8_169, %c0_170, %c0_171] : memref<9x32x8xf32, #tpu.memory_space<vmem>>, vector<1x32x8xf32>
    %301 = vector.shape_cast %300 : vector<1x32x8xf32> to vector<32x8xf32>
    %cst_172 = arith.constant dense<0.000000e+00> : vector<32x64xf32>
    %302 = tpu.matmul %301, %299, %cst_172 {dimension_numbers = #tpu.dot_dimension_numbers<[1], [0], [0], [1], [0, 0, 1, 1], [], []>} : vector<32x8xf32>, vector<8x64xf32>, vector<32x64xf32> -> vector<32x64xf32>
    %303 = arith.addf %289, %302 : vector<32x64xf32>
    %cst_173 = arith.constant 0.000000e+00 : f32
    %304 = vector.broadcast %cst_173 : f32 to vector<32x64xf32>
    %305 = arith.maximumf %303, %304 : vector<32x64xf32>
    %c0_174 = arith.constant 0 : index
    %c128_175 = arith.constant 128 : index
    %306 = vector.load %arg10[%c0_174, %c128_175] : memref<32x320xf32, #tpu.memory_space<vmem>>, vector<32x64xf32>
    tpu.vector_store %arg10[%c0_174, %c128_175], %305 {strides = array<i32>} : memref<32x320xf32, #tpu.memory_space<vmem>>, vector<32x64xf32>,
    %c0_176 = arith.constant 0 : index
    %c119_177 = arith.constant 119 : index
    %307 = vector.load %arg10[%c0_176, %c119_177] : memref<32x320xf32, #tpu.memory_space<vmem>>, vector<32x64xf32>
    %c1_i32_178 = arith.constant 1 : i32
    %308 = vector.broadcast %c1_i32_178 : i32 to vector<1x64xi32>
    %309 = arith.cmpi sge, %7, %308 : vector<1x64xi32>
    %c1_i32_179 = arith.constant 1 : i32
    %310 = vector.broadcast %c1_i32_179 : i32 to vector<1x64xi32>
    %311 = arith.cmpi sge, %9, %310 : vector<1x64xi32>
    %312 = arith.andi %309, %311 : vector<1x64xi1>
    %cst_180 = arith.constant 0.000000e+00 : f32
    %313 = vector.shape_cast %312 : vector<1x64xi1> to vector<1x64xi1>
    %314 = vector.broadcast %313 : vector<1x64xi1> to vector<32x64xi1>
    %315 = vector.broadcast %cst_180 : f32 to vector<32x64xf32>
    %316 = arith.select %314, %307, %315 : vector<32x64xi1>, vector<32x64xf32>
    %c0_181 = arith.constant 0 : index
    %c120_182 = arith.constant 120 : index
    %317 = vector.load %arg10[%c0_181, %c120_182] : memref<32x320xf32, #tpu.memory_space<vmem>>, vector<32x64xf32>
    %c1_i32_183 = arith.constant 1 : i32
    %318 = vector.broadcast %c1_i32_183 : i32 to vector<1x64xi32>
    %319 = arith.cmpi sge, %7, %318 : vector<1x64xi32>
    %cst_184 = arith.constant 0.000000e+00 : f32
    %320 = vector.shape_cast %319 : vector<1x64xi1> to vector<1x64xi1>
    %321 = vector.broadcast %320 : vector<1x64xi1> to vector<32x64xi1>
    %322 = vector.broadcast %cst_184 : f32 to vector<32x64xf32>
    %323 = arith.select %321, %317, %322 : vector<32x64xi1>, vector<32x64xf32>
    %324 = arith.maximumf %316, %323 : vector<32x64xf32>
    %c0_185 = arith.constant 0 : index
    %c121_186 = arith.constant 121 : index
    %325 = vector.load %arg10[%c0_185, %c121_186] : memref<32x320xf32, #tpu.memory_space<vmem>>, vector<32x64xf32>
    %c1_i32_187 = arith.constant 1 : i32
    %326 = vector.broadcast %c1_i32_187 : i32 to vector<1x64xi32>
    %327 = arith.cmpi sge, %7, %326 : vector<1x64xi32>
    %c7_i32_188 = arith.constant 7 : i32
    %328 = vector.broadcast %c7_i32_188 : i32 to vector<1x64xi32>
    %329 = arith.cmpi slt, %9, %328 : vector<1x64xi32>
    %330 = arith.andi %327, %329 : vector<1x64xi1>
    %cst_189 = arith.constant 0.000000e+00 : f32
    %331 = vector.shape_cast %330 : vector<1x64xi1> to vector<1x64xi1>
    %332 = vector.broadcast %331 : vector<1x64xi1> to vector<32x64xi1>
    %333 = vector.broadcast %cst_189 : f32 to vector<32x64xf32>
    %334 = arith.select %332, %325, %333 : vector<32x64xi1>, vector<32x64xf32>
    %335 = arith.maximumf %324, %334 : vector<32x64xf32>
    %c0_190 = arith.constant 0 : index
    %c127_191 = arith.constant 127 : index
    %336 = vector.load %arg10[%c0_190, %c127_191] : memref<32x320xf32, #tpu.memory_space<vmem>>, vector<32x64xf32>
    %c1_i32_192 = arith.constant 1 : i32
    %337 = vector.broadcast %c1_i32_192 : i32 to vector<1x64xi32>
    %338 = arith.cmpi sge, %9, %337 : vector<1x64xi32>
    %cst_193 = arith.constant 0.000000e+00 : f32
    %339 = vector.shape_cast %338 : vector<1x64xi1> to vector<1x64xi1>
    %340 = vector.broadcast %339 : vector<1x64xi1> to vector<32x64xi1>
    %341 = vector.broadcast %cst_193 : f32 to vector<32x64xf32>
    %342 = arith.select %340, %336, %341 : vector<32x64xi1>, vector<32x64xf32>
    %343 = arith.maximumf %335, %342 : vector<32x64xf32>
    %c0_194 = arith.constant 0 : index
    %c128_195 = arith.constant 128 : index
    %344 = vector.load %arg10[%c0_194, %c128_195] : memref<32x320xf32, #tpu.memory_space<vmem>>, vector<32x64xf32>
    %345 = arith.maximumf %343, %344 : vector<32x64xf32>
    %c0_196 = arith.constant 0 : index
    %c129_197 = arith.constant 129 : index
    %346 = vector.load %arg10[%c0_196, %c129_197] : memref<32x320xf32, #tpu.memory_space<vmem>>, vector<32x64xf32>
    %c7_i32_198 = arith.constant 7 : i32
    %347 = vector.broadcast %c7_i32_198 : i32 to vector<1x64xi32>
    %348 = arith.cmpi slt, %9, %347 : vector<1x64xi32>
    %cst_199 = arith.constant 0.000000e+00 : f32
    %349 = vector.shape_cast %348 : vector<1x64xi1> to vector<1x64xi1>
    %350 = vector.broadcast %349 : vector<1x64xi1> to vector<32x64xi1>
    %351 = vector.broadcast %cst_199 : f32 to vector<32x64xf32>
    %352 = arith.select %350, %346, %351 : vector<32x64xi1>, vector<32x64xf32>
    %353 = arith.maximumf %345, %352 : vector<32x64xf32>
    %c0_200 = arith.constant 0 : index
    %c135_201 = arith.constant 135 : index
    %354 = vector.load %arg10[%c0_200, %c135_201] : memref<32x320xf32, #tpu.memory_space<vmem>>, vector<32x64xf32>
    %c7_i32_202 = arith.constant 7 : i32
    %355 = vector.broadcast %c7_i32_202 : i32 to vector<1x64xi32>
    %356 = arith.cmpi slt, %7, %355 : vector<1x64xi32>
    %c1_i32_203 = arith.constant 1 : i32
    %357 = vector.broadcast %c1_i32_203 : i32 to vector<1x64xi32>
    %358 = arith.cmpi sge, %9, %357 : vector<1x64xi32>
    %359 = arith.andi %356, %358 : vector<1x64xi1>
    %cst_204 = arith.constant 0.000000e+00 : f32
    %360 = vector.shape_cast %359 : vector<1x64xi1> to vector<1x64xi1>
    %361 = vector.broadcast %360 : vector<1x64xi1> to vector<32x64xi1>
    %362 = vector.broadcast %cst_204 : f32 to vector<32x64xf32>
    %363 = arith.select %361, %354, %362 : vector<32x64xi1>, vector<32x64xf32>
    %364 = arith.maximumf %353, %363 : vector<32x64xf32>
    %c0_205 = arith.constant 0 : index
    %c136_206 = arith.constant 136 : index
    %365 = vector.load %arg10[%c0_205, %c136_206] : memref<32x320xf32, #tpu.memory_space<vmem>>, vector<32x64xf32>
    %c7_i32_207 = arith.constant 7 : i32
    %366 = vector.broadcast %c7_i32_207 : i32 to vector<1x64xi32>
    %367 = arith.cmpi slt, %7, %366 : vector<1x64xi32>
    %cst_208 = arith.constant 0.000000e+00 : f32
    %368 = vector.shape_cast %367 : vector<1x64xi1> to vector<1x64xi1>
    %369 = vector.broadcast %368 : vector<1x64xi1> to vector<32x64xi1>
    %370 = vector.broadcast %cst_208 : f32 to vector<32x64xf32>
    %371 = arith.select %369, %365, %370 : vector<32x64xi1>, vector<32x64xf32>
    %372 = arith.maximumf %364, %371 : vector<32x64xf32>
    %c0_209 = arith.constant 0 : index
    %c137_210 = arith.constant 137 : index
    %373 = vector.load %arg10[%c0_209, %c137_210] : memref<32x320xf32, #tpu.memory_space<vmem>>, vector<32x64xf32>
    %c7_i32_211 = arith.constant 7 : i32
    %374 = vector.broadcast %c7_i32_211 : i32 to vector<1x64xi32>
    %375 = arith.cmpi slt, %7, %374 : vector<1x64xi32>
    %c7_i32_212 = arith.constant 7 : i32
    %376 = vector.broadcast %c7_i32_212 : i32 to vector<1x64xi32>
    %377 = arith.cmpi slt, %9, %376 : vector<1x64xi32>
    %378 = arith.andi %375, %377 : vector<1x64xi1>
    %cst_213 = arith.constant 0.000000e+00 : f32
    %379 = vector.shape_cast %378 : vector<1x64xi1> to vector<1x64xi1>
    %380 = vector.broadcast %379 : vector<1x64xi1> to vector<32x64xi1>
    %381 = vector.broadcast %cst_213 : f32 to vector<32x64xf32>
    %382 = arith.select %380, %373, %381 : vector<32x64xi1>, vector<32x64xf32>
    %383 = arith.maximumf %372, %382 : vector<32x64xf32>
    %c0_214 = arith.constant 0 : index
    %c0_215 = arith.constant 0 : index
    %384 = vector.load %arg5[%c0_214, %c0_215] : memref<16x64xf32, #tpu.memory_space<vmem>>, vector<16x64xf32>
    %cst_216 = arith.constant dense<0.000000e+00> : vector<16x32xf32>
    %385 = tpu.matmul %384, %383, %cst_216 {dimension_numbers = #tpu.dot_dimension_numbers<[1], [1], [0], [0], [0, 0, 1, 0], [], []>} : vector<16x64xf32>, vector<32x64xf32>, vector<16x32xf32> -> vector<16x32xf32>
    %c0_217 = arith.constant 0 : index
    %c0_218 = arith.constant 0 : index
    %c0_219 = arith.constant 0 : index
    %386 = vector.load %arg6[%c0_217, %c0_218, %c0_219] : memref<1x16x32xf32, #tpu.memory_space<vmem>>, vector<1x16x32xf32>
    %387 = vector.shape_cast %386 : vector<1x16x32xf32> to vector<16x32xf32>
    %388 = vector.shape_cast %385 : vector<16x32xf32> to vector<1x16x32xf32>
    tpu.vector_store %arg6[%c0_217, %c0_218, %c0_219], %388 {strides = array<i32>} : memref<1x16x32xf32, #tpu.memory_space<vmem>>, vector<1x16x32xf32>,
    return
  }
  func.func @transform_0(%arg0: i32) -> (i32, i32, i32) {
    %c0_i32 = arith.constant 0 : i32
    %c0_i32_0 = arith.constant 0 : i32
    %c0_i32_1 = arith.constant 0 : i32
    return %arg0, %c0_i32, %c0_i32_0 : i32, i32, i32
  }
  func.func @transform_1(%arg0: i32) -> (i32, i32, i32) {
    %c0_i32 = arith.constant 0 : i32
    %c0_i32_0 = arith.constant 0 : i32
    %c0_i32_1 = arith.constant 0 : i32
    %c0_i32_2 = arith.constant 0 : i32
    return %c0_i32, %c0_i32_0, %c0_i32_1 : i32, i32, i32
  }
  func.func @transform_2(%arg0: i32) -> (i32, i32, i32) {
    %c0_i32 = arith.constant 0 : i32
    %c0_i32_0 = arith.constant 0 : i32
    %c0_i32_1 = arith.constant 0 : i32
    %c0_i32_2 = arith.constant 0 : i32
    return %c0_i32, %c0_i32_0, %c0_i32_1 : i32, i32, i32
  }
  func.func @transform_3(%arg0: i32) -> (i32, i32) {
    %c0_i32 = arith.constant 0 : i32
    %c0_i32_0 = arith.constant 0 : i32
    %c0_i32_1 = arith.constant 0 : i32
    return %c0_i32, %c0_i32_0 : i32, i32
  }
  func.func @transform_4(%arg0: i32) -> (i32, i32) {
    %c0_i32 = arith.constant 0 : i32
    %c0_i32_0 = arith.constant 0 : i32
    %c0_i32_1 = arith.constant 0 : i32
    return %c0_i32, %c0_i32_0 : i32, i32
  }
  func.func @transform_5(%arg0: i32) -> (i32, i32, i32) {
    %c0_i32 = arith.constant 0 : i32
    %c0_i32_0 = arith.constant 0 : i32
    %c0_i32_1 = arith.constant 0 : i32
    return %arg0, %c0_i32, %c0_i32_0 : i32, i32, i32
  }
}

</mosaic_0001>

<bundles_post_ra>
// kernel: conv_tokenizer_forward.1
= control target key start
LH: loop header
LB: loop body
LE: loop exit
PB: predicated region body
PF: predicated region fallthrough
CT: control target
= control target key end

     0   :  { %10 = vsyncpa [#allocation7], 0  ;;  %s3348_s0 = inlined_call_operand.vmem [shape: f32[2,4,256], index: 0, kind: input, shape index: {}]   ;;  %s3349_s1 = inlined_call_operand.vmem [shape: f32[9,8,4], index: 1, kind: input, shape index: {}]   ;;  %s3350_s2 = inlined_call_operand.vmem [shape: f32[9,32,8], index: 2, kind: input, shape index: {}]   ;;  %s3351_s3 = inlined_call_operand.vmem [shape: f32[256,64], index: 3, kind: input, shape index: {}]   ;;  %s3352_s4 = inlined_call_operand.vmem [shape: f32[16,64], index: 4, kind: input, shape index: {}]   ;;  %s3353_s5 = inlined_call_operand.hbm [shape: f32[2,16,32], index: 5, kind: output, shape index: {}]  }
   0x1   :  { %12 = vsyncpa [#allocation7 + $0x1], 0  ;;  %s2360_s18 = smov 0   ;;  %s2362_s19 = smov 0  }
   0x2   :  { %s2364_s20 = smov 0   ;;  %s2366_s21 = smov 0  }
   0x3 LB: > { %s2381_s22 = sadd.s32 4294967295, %s2313_s21   ;;  %s2017_s23 = sadd.s32 4294967294, %s2313_s21   ;;  %s2313_s21 = sphi %s2366_s21, %s3420_s21   ;;  %s2309_s20 = sphi %s2364_s20, %s3419_s20   ;;  %s2305_s19 = sphi %s2362_s19, %s3418_s19   ;;  %s2301_s18 = sphi %s2360_s18, %s3417_s18  }
   0x4   : > { %s2385_s24 = sadd.s32 1, %s2313_s21   ;;  %s135_s25 = sadd.s32 1, %s2309_s20 }
   0x5   : > { %s132_s26 = ssub.s32 %s2313_s21, %s2385_s24  ;;  %p145_p0 = scmp.ne.s32.totalorder %s2309_s20, %s2305_s19 }
   0x6   : > { %p133_p1 = scmp.eq.s32.totalorder %s132_s26, 0  ;;  %p146_p2 = scmp.eq.s32.totalorder %s2381_s22, 1 }
   0x7   : > { %p151_p3 = scmp.ne.s32.totalorder %s2305_s19, %s2301_s18  ;;  %p152_p4 = scmp.eq.s32.totalorder %s2017_s23, 1 }
   0x8   : > { %s2396_s27 = scalar_select %p133_p1, %s2309_s20, %s135_s25  }
   0x9   : > { %p2398_p5 = por %p146_p2, %p145_p0  ;;  %p2402_p6 = por %p152_p4, %p151_p3 }
   0xa   : > { %p2020_p7 = scmp.ge.s32.totalorder %s2313_s21, 1  ;;  %p190_p8 = scmp.lt.s32.totalorder %s2313_s21, 3 }
   0xc   : > { %p191_p9 = pnand %p2020_p7, %p190_p8 }
   0xd   : > { %p218_p10 = scmp.lt.s32.totalorder (!%p191_p9), %s2381_s22, 1  ;;  %s2315_s10 = smov (!%p191_p9), 17  }
   0xe   : > { %194 = sbr.rel (%p191_p9) target bundleno = 1296 (0x510), region = 40  ;;  %s2316_s11 = smov (!%p191_p9), 16  }
   0xf   : > { %s2317_s12 = smov (!%p191_p9), 15   ;;  %s2318_s13 = smov (!%p191_p9), 1  }
  0x10   : > { %s2319_s14 = smov (!%p191_p9), 127   ;;  %s2320_s15 = smov (!%p191_p9), 113  }
  0x11   : > { %s2321_s16 = smov (!%p191_p9), 112   ;;  %s2322_s17 = smov (!%p191_p9), 111  }
  0x12   : > { %s2325_s8 = smov (!%p191_p9), 121   ;;  %s2327_s23 = smov (!%p191_p9), 119  }
  0x13   : > { %s219_s30 = scalar_select %p218_p10, %s2381_s22, 1  ;;  %v618_v15 = vld [vmem:[#allocation2 + $0xc] sm:$0xf]  ;;  %v223_v36 = vlaneseq  ;;  %vm260_vm5 = vcmask 138240   ;;  %vm301_vm7 = vcmask 1043456   ;;  %v267_v54 = vld [vmem:[%s3349_s1] sm:$0xff] }
  0x14   : > { %v698_v19 = vld [vmem:[#allocation2 + $0xc] sm:$0xf]  ;;  %vm297_vm8 = vcmask 31744   ;;  %vm288_vm10 = vcmask 130048   ;;  %vm421_vm11 = vcmask 121856   ;;  %v2024_v63 = vld [vmem:[%s3349_s1 + $0x8] sm:$0xff] }
  0x15   : > { %s2155_s6 = sshll.u32 %s219_s30, 3  ;;  %v782_v23 = vld [vmem:[#allocation2 + $0xc] sm:$0xf]  ;;  %v2449_v38 = vand.u32 127, %v223_v36  ;;  %vm3355_vm14 = vcmask 7168   ;;  %s2328_s25 = smov 120  }
  0x16   : > { %s222_s9 = scalar_lea.vmem %s3348_s0, %s2155_s6  ;;  %v862_v27 = vld [vmem:[#allocation2 + $0xc] sm:$0xf] }
  0x17   : > { %v2413_v0 = vld [vmem:[%s222_s9] sm:$0xff]  ;;  %v2452_v39 = vadd.s32 128, %v2449_v38  ;;  %v226_v40 = vshra.s32 %v2449_v38, 4  ;;  %v228_v41 = vand.u32 15, %v2449_v38  ;;  %s2326_s9 = smov 9   ;;  %v230_v58 = vshra.s32 %v2449_v38, 3 }
  0x18   : > { %233 = vst [vmem:[#allocation2 + $0x4] sm:$0xff] %v2413_v0 }
  0x19   : > { %v227_v43 = vshra.s32 %v2452_v39, 4  ;;  %v229_v44 = vand.u32 15, %v2452_v39  ;;  %vm2460_vm0 = vcmp.ge.s32.totalorder %v226_v40, 1  ;;  %vm2464_vm1 = vcmp.ge.s32.totalorder %v228_v41, 1 }
  0x1a   : > { %vm3359_vm4 = vmand %vm2460_vm0, %vm2464_vm1  ;;  %vm2530_vm13 = vcmp.lt.s32.totalorder %v228_v41, 15 }
  0x1b   : > { %vm2470_vm2 = vcmp.ge.s32.totalorder %v227_v43, 1  ;;  %vm2474_vm3 = vcmp.ge.s32.totalorder %v229_v44, 1  ;;  %vm2505_vm9 = vcmp.lt.s32.totalorder %v229_v44, 15  ;;  %vm3357_vm15 = vmand %vm2460_vm0, %vm2530_vm13 }
  0x1c   : > { %vm3358_vm6 = vmand %vm2470_vm2, %vm2474_vm3 }
  0x1d   : > { %vm3354_vm12 = vmand %vm2470_vm2, %vm2505_vm9 }
  0x1f   : > { %v234_v1 = vld [vmem:[#allocation2] sm:$0xff]  ;;  %v235_v2 = vld [vmem:[#allocation2 + $0x8] sm:$0xf] }
  0x20   : > { %248 = vst [vmem:[#allocation1] ss:$2 sm:$0xff] %v234_v1  ;;  %v269_v3 = vld [vmem:[#allocation2 + $0x8] sm:$0xf] }
  0x21   : > { %250 = vst [vmem:[#allocation1 + $0x10] ss:$2 sm:$0xff] %v235_v2  ;;  %v398_v7 = vld [vmem:[#allocation2 + $0x8] sm:$0xf] }
  0x22   : > { %v482_v11 = vld [vmem:[#allocation2 + $0x8] sm:$0xf] }
  0x27   : > { %v251_v4 = vld.sshfl [vmem:[#allocation1] sm:$0xff pattern:$0x75316420]  ;;  %v252_v5 = vld.sshfl [vmem:[#allocation1 + $0x8] sm:$0xff pattern:$0x75316420] }
  0x28   : > { %254 = vrot.lane.b32.xlu1 %v251_v4, %s2315_s10  ;;  %276 = vst [vmem:[#allocation1] ss:$2 sm:$0xff] %v234_v1  ;;  %v253_v6 = vld.sshfl [vmem:[#allocation1 + $0x10] sm:$0xff pattern:$0x75316420] }
  0x29   : > { %258 = vrot.lane.b32.xlu2 %v253_v6, %s2315_s10  ;;  %278 = vst [vmem:[#allocation1 + $0x10] ss:$2 sm:$0xff] %v269_v3 }
  0x2f   : > { %v279_v8 = vld.sshfl [vmem:[#allocation1] sm:$0xff pattern:$0x75316420]  ;;  %v280_v9 = vld.sshfl [vmem:[#allocation1 + $0x8] sm:$0xff pattern:$0x75316420] }
  0x30   : > { %256 = vrot.lane.b32.xlu1 %v252_v5, %s2315_s10  ;;  %282 = vrot.lane.b32.xlu0 %v279_v8, %s2316_s11  ;;  %409 = vst [vmem:[#allocation1] ss:$2 sm:$0xff] %v234_v1  ;;  %v281_v10 = vld.sshfl [vmem:[#allocation1 + $0x10] sm:$0xff pattern:$0x75316420] }
  0x31   : > { %286 = vrot.lane.b32.xlu2 %v281_v10, %s2316_s11  ;;  %411 = vst [vmem:[#allocation1 + $0x10] ss:$2 sm:$0xff] %v398_v7 }
  0x37   : > { %v413_v12 = vld.sshfl [vmem:[#allocation1 + $0x8] sm:$0xff pattern:$0x75316420]  ;;  %v412_v13 = vld.sshfl [vmem:[#allocation1] sm:$0xff pattern:$0x75316420] }
  0x38   : > { %284 = vrot.lane.b32.xlu0 %v280_v9, %s2316_s11  ;;  %417 = vrot.lane.b32.xlu1 %v413_v12, %s2317_s12  ;;  %489 = vst [vmem:[#allocation1] ss:$2 sm:$0xff] %v234_v1  ;;  %v414_v14 = vld.sshfl [vmem:[#allocation1 + $0x10] sm:$0xff pattern:$0x75316420] }
  0x39   : > { %419 = vrot.lane.b32.xlu2 %v414_v14, %s2317_s12  ;;  %491 = vst [vmem:[#allocation1 + $0x10] ss:$2 sm:$0xff] %v482_v11  ;;  %v2033_v9 = vld [vmem:[%s3349_s1 + $0x10] sm:$0xff] }
  0x3f   : > { %v493_v16 = vld.sshfl [vmem:[#allocation1 + $0x8] sm:$0xff pattern:$0x75316420]  ;;  %v492_v17 = vld.sshfl [vmem:[#allocation1] sm:$0xff pattern:$0x75316420] }
  0x40   : > { %415 = vrot.lane.b32.xlu0 %v412_v13, %s2317_s12  ;;  %497 = vrot.lane.b32.xlu1 %v493_v16, %s2318_s13  ;;  %565 = vst [vmem:[#allocation1] ss:$2 sm:$0xff] %v2413_v0  ;;  %v494_v18 = vld.sshfl [vmem:[#allocation1 + $0x10] sm:$0xff pattern:$0x75316420]  ;;  %v2038_v13 = vld [vmem:[%s3349_s1 + $0x18] sm:$0xff] }
  0x41   : > { %499 = vrot.lane.b32.xlu2 %v494_v18, %s2318_s13  ;;  %627 = vst [vmem:[#allocation1 + $0x10] ss:$2 sm:$0xff] %v618_v15  ;;  %v2043_v18 = vld [vmem:[%s3349_s1 + $0x20] sm:$0xff] }
  0x47   : > { %v2428_v20 = vld.sshfl [vmem:[#allocation1] sm:$0xff pattern:$0x75316420]  ;;  %v2430_v21 = vld.sshfl [vmem:[#allocation1 + $0x8] sm:$0xff pattern:$0x75316420] }
  0x48   : > { %495 = vrot.lane.b32.xlu0 %v492_v17, %s2318_s13  ;;  %625 = vst [vmem:[#allocation1] ss:$2 sm:$0xff] %v2413_v0  ;;  %v630_v22 = vld.sshfl [vmem:[#allocation1 + $0x10] sm:$0xff pattern:$0x75316420] }
  0x49   : > { %635 = vrot.lane.b32.xlu2 %v630_v22, %s2319_s14  ;;  %711 = vst [vmem:[#allocation1 + $0x10] ss:$2 sm:$0xff] %v698_v19 }
  0x4f   : > { %v629_v24 = vld.sshfl [vmem:[#allocation1 + $0x8] sm:$0xff pattern:$0x75316420]  ;;  %v628_v25 = vld.sshfl [vmem:[#allocation1] sm:$0xff pattern:$0x75316420] }
  0x50   : > { %633 = vrot.lane.b32.xlu1 %v629_v24, %s2319_s14  ;;  %631 = vrot.lane.b32.xlu0 %v628_v25, %s2319_s14  ;;  %709 = vst [vmem:[#allocation1] ss:$2 sm:$0xff] %v2413_v0  ;;  %v714_v26 = vld.sshfl [vmem:[#allocation1 + $0x10] sm:$0xff pattern:$0x75316420] }
  0x51   : > { %719 = vrot.lane.b32.xlu2 %v714_v26, %s2320_s15  ;;  %791 = vst [vmem:[#allocation1 + $0x10] ss:$2 sm:$0xff] %v782_v23  ;;  %v2048_v23 = vld [vmem:[%s3349_s1 + $0x28] sm:$0xff] }
  0x57   : > { %v713_v28 = vld.sshfl [vmem:[#allocation1 + $0x8] sm:$0xff pattern:$0x75316420]  ;;  %v712_v29 = vld.sshfl [vmem:[#allocation1] sm:$0xff pattern:$0x75316420] }
  0x58   : > { %717 = vrot.lane.b32.xlu1 %v713_v28, %s2320_s15  ;;  %715 = vrot.lane.b32.xlu0 %v712_v29, %s2320_s15  ;;  %789 = vst [vmem:[#allocation1] ss:$2 sm:$0xff] %v2413_v0  ;;  %v794_v30 = vld.sshfl [vmem:[#allocation1 + $0x10] sm:$0xff pattern:$0x75316420] }
  0x59   : > { %799 = vrot.lane.b32.xlu2 %v794_v30, %s2321_s16  ;;  %873 = vst [vmem:[#allocation1 + $0x10] ss:$2 sm:$0xff] %v862_v27 }
  0x5f   : > { %v793_v31 = vld.sshfl [vmem:[#allocation1 + $0x8] sm:$0xff pattern:$0x75316420]  ;;  %v792_v32 = vld.sshfl [vmem:[#allocation1] sm:$0xff pattern:$0x75316420] }
  0x60   : > { %797 = vrot.lane.b32.xlu1 %v793_v31, %s2321_s16  ;;  %795 = vrot.lane.b32.xlu0 %v792_v32, %s2321_s16  ;;  %871 = vst [vmem:[#allocation1] ss:$2 sm:$0xff] %v2413_v0  ;;  %v876_v33 = vld.sshfl [vmem:[#allocation1 + $0x10] sm:$0xff pattern:$0x75316420] }
  0x61   : > { %881 = vrot.lane.b32.xlu2 %v876_v33, %s2322_s17  ;;  %v2053_v33 = vld [vmem:[%s3349_s1 + $0x30] sm:$0xff] }
  0x67   : > { %v875_v34 = vld.sshfl [vmem:[#allocation1 + $0x8] sm:$0xff pattern:$0x75316420]  ;;  %v874_v35 = vld.sshfl [vmem:[#allocation1] sm:$0xff pattern:$0x75316420] }
  0x68   : > { %879 = vrot.lane.b32.xlu1 %v875_v34, %s2322_s17  ;;  %877 = vrot.lane.b32.xlu0 %v874_v35, %s2322_s17 }
  0x83   : > { %v259_v37 = vpop.permute.xlu2 %258 }
  0x8b   : > { %v287_v45 = vpop.permute.xlu2 %286 }
  0x93   : > { %v420_v57 = vpop.permute.xlu2 %419 }
  0x9a   : > { %v255_v42 = vpop.permute.xlu1 %254 }
  0x9b   : > { %v500_v5 = vpop.permute.xlu2 %499 }
  0xa2   : > { %v257_v50 = vpop.permute.xlu1 %256  ;;  %v283_v51 = vpop.permute.xlu0 %282 }
  0xa3   : > { %v261_v52 = vsel %vm260_vm5, %v255_v42, %v257_v50  ;;  %v262_v53 = vsel %vm260_vm5, %v257_v50, %v259_v37  ;;  %v636_v15 = vpop.permute.xlu2 %635  ;;  %v2058_v42 = vld [vmem:[%s3349_s1 + $0x38] sm:$0xff] }
  0xa4   : > { %v265_v55 = vsel %vm3359_vm4, %v261_v52, 0.0  ;;  %v266_v56 = vsel %vm3358_vm6, %v262_v53, 0.0  ;;  %vm3360_vm6 = vcmask 924672  }
  0xa5   : > { %2029 = vmatpush.msk.msra.mxu2 %vm301_vm7, %v265_v55  ;;  %2031 = vmatpush.msk.msra.mxu3 %vm301_vm7, %v266_v56 }
  0xa6   : > { %2030 = vmatmul.msk.f32.vlgmr.msra.gmra.mxu2 %vm297_vm8, %v267_v54  ;;  %2032 = vmatmul.msk.f32.vlgmr.msra.gmra.mxu3 %vm297_vm8, %v267_v54  ;;  %v2063_v54 = vld [vmem:[%s3349_s1 + $0x40] sm:$0xff] }
  0xaa   : > { %v285_v59 = vpop.permute.xlu0 %284  ;;  %v418_v60 = vpop.permute.xlu1 %417 }
  0xab   : > { %v290_v61 = vsel %vm288_vm10, %v285_v59, %v287_v45  ;;  %v289_v62 = vsel %vm288_vm10, %v283_v51, %v285_v59  ;;  %v423_v0 = vsel %vm421_vm11, %v418_v60, %v420_v57  ;;  %v720_v26 = vpop.permute.xlu2 %719 }
  0xac   : > { %v293_v1 = vsel %vm2460_vm0, %v289_v62, 0.0  ;;  %v294_v2 = vsel %vm2470_vm2, %v290_v61, 0.0  ;;  %v427_v3 = vsel %vm3354_vm12, %v423_v0, 0.0  ;;  %vm3356_vm12 = vcmask 1039360  }
  0xad   : > { %2025 = vmatpush.msk.msra.mxu1 %vm301_vm7, %v293_v1 }
  0xae   : > { %2026 = vmatmul.msk.f32.vlgmr.msra.gmra.mxu1 %vm297_vm8, %v2024_v63 }
  0xaf   : > { %2027 = vmatpush.msk.msrb.mxu1 %vm301_vm7, %v294_v2 }
  0xb1   : > { %2036 = vmatpush.msk.msra.mxu1 %vm301_vm7, %v427_v3 }
  0xb2   : > { %v416_v6 = vpop.permute.xlu0 %415  ;;  %v498_v7 = vpop.permute.xlu1 %497 }
  0xb3   : > { %v422_v8 = vsel %vm421_vm11, %v416_v6, %v418_v60  ;;  %v503_v10 = vsel %vm3355_vm14, %v498_v7, %v500_v5  ;;  %v800_v36 = vpop.permute.xlu2 %799  ;;  %v1011_v60 = vld [vmem:[#allocation3 + $0x10] sm:$0xff] }
  0xb4   : > { %v426_v11 = vsel %vm3357_vm15, %v422_v8, 0.0  ;;  %v507_v12 = vsel %vm2474_vm3, %v503_v10, 0.0  ;;  %1033 = vrot.lane.b32.xlu2 %v1011_v60, %s2320_s15  ;;  %1019 = vrot.lane.b32.xlu0 %v1011_v60, %s2319_s14 }
  0xb5   : > { %2034 = vmatpush.msk.msra.mxu0 %vm301_vm7, %v426_v11  ;;  %2041 = vmatpush.msk.msrb.mxu3 %vm301_vm7, %v507_v12 }
  0xb6   : > { %2028 = vmatmul.msk.f32.vlgmr.msrb.gmra.mxu1 %vm297_vm8, %v2024_v63  ;;  %2035 = vmatmul.msk.f32.vlgmr.msra.gmra.mxu0 %vm297_vm8, %v2033_v9 }
  0xb7   : > { %2042 = vmatmul.msk.f32.vlgmr.msrb.gmra.mxu3 %vm297_vm8, %v2038_v13  ;;  %2044 = vmatpush.msk.msrb.mxu0 %vm301_vm7, %v2428_v20 }
  0xb8   : > { %2046 = vmatpush.msk.msrb.mxu1 %vm301_vm7, %v2430_v21 }
  0xba   : > { %v496_v14 = vpop.permute.xlu0 %495 }
  0xbb   : > { %v502_v16 = vsel %vm3355_vm14, %v496_v14, %v498_v7  ;;  %vm2587_vm14 = vcmp.lt.s32.totalorder %v227_v43, 15  ;;  %v882_v45 = vpop.permute.xlu2 %881 }
  0xbc   : > { %v506_v17 = vsel %vm2464_vm1, %v502_v16, 0.0  ;;  %vm3361_vm15 = vmand %vm2587_vm14, %vm2474_vm3 }
  0xbd   : > { %2039 = vmatpush.msk.msrb.mxu2 %vm301_vm7, %v506_v17 }
  0xbe   : > { %2037 = vmatmul.msk.f32.vlgmr.msra.gmra.mxu1 %vm297_vm8, %v2033_v9  ;;  %2040 = vmatmul.msk.f32.vlgmr.msrb.gmra.mxu2 %vm297_vm8, %v2038_v13 }
  0xbf   : > { %2045 = vmatmul.msk.f32.vlgmr.msrb.gmra.mxu0 %vm297_vm8, %v2043_v18 }
  0xc2   : > { %v634_v19 = vpop.permute.xlu1 %633  ;;  %v632_v20 = vpop.permute.xlu0 %631 }
  0xc3   : > { %v639_v21 = vsel %vm3356_vm12, %v634_v19, %v636_v15  ;;  %v638_v22 = vsel %vm3356_vm12, %v632_v20, %v634_v19  ;;  %vm2595_vm12 = vcmp.lt.s32.totalorder %v226_v40, 15 }
  0xc4   : > { %v643_v24 = vsel %vm2505_vm9, %v639_v21, 0.0  ;;  %v642_v25 = vsel %vm2530_vm13, %v638_v22, 0.0  ;;  %vm3363_vm4 = vmand %vm2595_vm12, %vm2464_vm1 }
  0xc5   : > { %2049 = vmatpush.msk.msra.mxu2 %vm301_vm7, %v642_v25  ;;  %2051 = vmatpush.msk.msra.mxu3 %vm301_vm7, %v643_v24 }
  0xc6   : > { %2047 = vmatmul.msk.f32.vlgmr.msrb.gmra.mxu1 %vm297_vm8, %v2043_v18  ;;  %2050 = vmatmul.msk.f32.vlgmr.msra.gmra.mxu2 %vm297_vm8, %v2048_v23 }
  0xc7   : > { %2052 = vmatmul.msk.f32.vlgmr.msra.gmra.mxu3 %vm297_vm8, %v2048_v23 }
  0xca   : > { %v718_v29 = vpop.permute.xlu1 %717  ;;  %v716_v30 = vpop.permute.xlu0 %715 }
  0xcb   : > { %v723_v31 = vsel %vm3360_vm6, %v718_v29, %v720_v26  ;;  %v722_v32 = vsel %vm3360_vm6, %v716_v30, %v718_v29  ;;  %vm3362_vm6 = vcmask 916480  }
  0xcc   : > { %v727_v34 = vsel %vm3361_vm15, %v723_v31, 0.0  ;;  %v726_v35 = vsel %vm3363_vm4, %v722_v32, 0.0  ;;  %vm864_vm15 = vmand %vm2587_vm14, %vm2505_vm9  ;;  %v947_v32 = vld [vmem:[#allocation3 + $0x18] sm:$0xff] }
  0xcd   : > { %2054 = vmatpush.msk.msra.mxu0 %vm301_vm7, %v726_v35  ;;  %2056 = vmatpush.msk.msra.mxu1 %vm301_vm7, %v727_v34  ;;  %vm863_vm4 = vmand %vm2595_vm12, %vm2530_vm13 }
  0xce   : > { %2055 = vmatmul.msk.f32.vlgmr.msra.gmra.mxu0 %vm297_vm8, %v2053_v33  ;;  %2057 = vmatmul.msk.f32.vlgmr.msra.gmra.mxu1 %vm297_vm8, %v2053_v33 }
  0xd2   : > { %v798_v37 = vpop.permute.xlu1 %797  ;;  %v796_v39 = vpop.permute.xlu0 %795 }
  0xd3   : > { %v803_v40 = vsel %vm3362_vm6, %v798_v37, %v800_v36  ;;  %v802_v41 = vsel %vm3362_vm6, %v796_v39, %v798_v37  ;;  %vm883_vm6 = vcmask 908288   ;;  %v1086_v37 = vld [vmem:[%s3351_s3 + $0x78] sm:$0xff]  ;;  %v1085_v39 = vld [vmem:[%s3351_s3 + $0x70] sm:$0xff] }
  0xd4   : > { %v807_v43 = vsel %vm2587_vm14, %v803_v40, 0.0  ;;  %v806_v44 = vsel %vm2595_vm12, %v802_v41, 0.0  ;;  %v1084_v40 = vld [vmem:[%s3351_s3 + $0x68] sm:$0xff]  ;;  %v1102_v41 = vld [vmem:[%s3351_s3 + $0xf8] sm:$0xff] }
  0xd5   : > { %2059 = vmatpush.msk.msrb.mxu2 %vm301_vm7, %v806_v44  ;;  %2061 = vmatpush.msk.msrb.mxu3 %vm301_vm7, %v807_v43  ;;  %v1101_v43 = vld [vmem:[%s3351_s3 + $0xf0] sm:$0xff]  ;;  %v1082_v44 = vld [vmem:[%s3351_s3 + $0x58] sm:$0xff] }
  0xd6   : > { %2060 = vmatmul.msk.f32.vlgmr.msrb.gmra.mxu2 %vm297_vm8, %v2058_v42  ;;  %2062 = vmatmul.msk.f32.vlgmr.msrb.gmra.mxu3 %vm297_vm8, %v2058_v42  ;;  %v1083_v42 = vld [vmem:[%s3351_s3 + $0x60] sm:$0xff] }
  0xd7   : > { %1103 = vmatpush.msra.mxu2 %v1086_v37  ;;  %1123 = vmatpush.msra.mxu3 %v1102_v41 }
  0xd9   : > { %1104 = vmatpush.msra.mxu2 %v1085_v39  ;;  %1124 = vmatpush.msra.mxu3 %v1101_v43 }
  0xda   : > { %v880_v50 = vpop.permute.xlu1 %879  ;;  %v878_v51 = vpop.permute.xlu0 %877 }
  0xdb   : > { %v885_v52 = vsel %vm883_vm6, %v880_v50, %v882_v45  ;;  %v884_v53 = vsel %vm883_vm6, %v878_v51, %v880_v50  ;;  %1105 = vmatpush.msra.mxu2 %v1084_v40  ;;  %v1100_v45 = vld [vmem:[%s3351_s3 + $0xe8] sm:$0xff]  ;;  %v1081_v50 = vld [vmem:[%s3351_s3 + $0x50] sm:$0xff]  ;;  %v1099_v51 = vld [vmem:[%s3351_s3 + $0xe0] sm:$0xff] }
  0xdc   : > { %v889_v55 = vsel %vm864_vm15, %v885_v52, 0.0  ;;  %v888_v56 = vsel %vm863_vm4, %v884_v53, 0.0  ;;  %1125 = vmatpush.msra.mxu3 %v1100_v45  ;;  %v1080_v53 = vld [vmem:[%s3351_s3 + $0x48] sm:$0xff] }
  0xdd   : > { %2064 = vmatpush.msk.msrb.mxu0 %vm301_vm7, %v888_v56  ;;  %2066 = vmatpush.msk.msrb.mxu1 %vm301_vm7, %v889_v55  ;;  %v1079_v55 = vld [vmem:[%s3351_s3 + $0x40] sm:$0xff]  ;;  %v1097_v56 = vld [vmem:[%s3351_s3 + $0xd0] sm:$0xff]  ;;  %vm3382_vm7 = vmand %vm2460_vm0, %vm2464_vm1 }
  0xde   : > { %2065 = vmatmul.msk.f32.vlgmr.msrb.gmra.mxu0 %vm297_vm8, %v2063_v54  ;;  %2067 = vmatmul.msk.f32.vlgmr.msrb.gmra.mxu1 %vm297_vm8, %v2063_v54  ;;  %v1098_v54 = vld [vmem:[%s3351_s3 + $0xd8] sm:$0xff]  ;;  %vm3383_vm8 = vmand %vm2470_vm2, %vm2474_vm3 }
  0xdf   : > { %1106 = vmatpush.msra.mxu2 %v1083_v42  ;;  %1126 = vmatpush.msra.mxu3 %v1099_v51 }
  0xe1   : > { %1107 = vmatpush.msra.mxu2 %v1082_v44  ;;  %1127 = vmatpush.msra.mxu3 %v1098_v54 }
  0xe3   : > { %1108 = vmatpush.msra.mxu2 %v1081_v50  ;;  %1128 = vmatpush.msra.mxu3 %v1097_v56 }
  0xe5   : > { %1109 = vmatpush.msra.mxu2 %v1080_v53 }
  0xe7   : > { %1110 = vmatpush.msra.mxu2 %v1079_v55 }
 0x10e   : > { %v2724_v52 = vpop.permute.xlu2 %1033 }
 0x129   : > { %v394_v61 = vpop.f32.mrf.mxu3  ;;  %v374_v62 = vpop.f32.mrf.mxu2 }
 0x12b   : > { %v325_v57 = vpop.f32.mrf.mxu1 }
 0x12c   : > { %v375_v2 = vadd.f32 %v374_v62, %v325_v57  ;;  %v1078_v57 = vld [vmem:[%s3351_s3 + $0x38] sm:$0xff]  ;;  %v2750_v62 = vpop.permute.xlu0 %1019 }
 0x12d   : > { %1111 = vmatpush.msra.mxu2 %v1078_v57 }
 0x133   : > { %v345_v59 = vpop.f32.mrf.mxu1  ;;  %v456_v0 = vpop.f32.mrf.mxu0 }
 0x134   : > { %v395_v3 = vadd.f32 %v394_v61, %v345_v59  ;;  %v479_v8 = vadd.f32 %v456_v0, %v375_v2  ;;  %v1096_v59 = vld [vmem:[%s3351_s3 + $0xc8] sm:$0xff]  ;;  %v1095_v61 = vld [vmem:[%s3351_s3 + $0xc0] sm:$0xff]  ;;  %v1094_v0 = vld [vmem:[%s3351_s3 + $0xb8] sm:$0xff] }
 0x135   : > { %1129 = vmatpush.msra.mxu3 %v1096_v59  ;;  %v1075_v2 = vld [vmem:[%s3351_s3 + $0x20] sm:$0xff] }
 0x137   : > { %1130 = vmatpush.msra.mxu3 %v1095_v61 }
 0x139   : > { %1131 = vmatpush.msra.mxu3 %v1094_v0 }
 0x13a   : > { %v556_v5 = vpop.f32.mrf.mxu3 }
 0x13b   : > { %v476_v63 = vpop.f32.mrf.mxu1 }
 0x13c   : > { %v592_v6 = vpop.f32.mrf.mxu0  ;;  %v480_v9 = vadd.f32 %v476_v63, %v395_v3  ;;  %v1076_v63 = vld [vmem:[%s3351_s3 + $0x28] sm:$0xff]  ;;  %v1093_v3 = vld [vmem:[%s3351_s3 + $0xb0] sm:$0xff] }
 0x13d   : > { %1132 = vmatpush.msra.mxu3 %v1093_v3 }
 0x13e   : > { %v560_v11 = vadd.f32 %v556_v5, %v480_v9  ;;  %v1074_v5 = vld [vmem:[%s3351_s3 + $0x18] sm:$0xff] }
 0x141   : > { %v536_v1 = vpop.f32.mrf.mxu2 }
 0x142   : > { %v559_v10 = vadd.f32 %v536_v1, %v479_v8  ;;  %v1091_v8 = vld [vmem:[%s3351_s3 + $0xa0] sm:$0xff] }
 0x143   : > { %v612_v7 = vpop.f32.mrf.mxu1 }
 0x144   : > { %v615_v14 = vadd.f32 %v592_v6, %v559_v10  ;;  %v616_v15 = vadd.f32 %v612_v7, %v560_v11  ;;  %v1092_v6 = vld [vmem:[%s3351_s3 + $0xa8] sm:$0xff]  ;;  %v1073_v7 = vld [vmem:[%s3351_s3 + $0x10] sm:$0xff]  ;;  %v1090_v11 = vld [vmem:[%s3351_s3 + $0x98] sm:$0xff] }
 0x145   : > { %1133 = vmatpush.msra.mxu3 %v1092_v6  ;;  %v1072_v10 = vld [vmem:[%s3351_s3 + $0x8] sm:$0xff] }
 0x147   : > { %1134 = vmatpush.msra.mxu3 %v1091_v8 }
 0x149   : > { %v672_v12 = vpop.f32.mrf.mxu2  ;;  %1135 = vmatpush.msra.mxu3 %v1090_v11 }
 0x14a   : > { %v692_v13 = vpop.f32.mrf.mxu3  ;;  %v695_v18 = vadd.f32 %v672_v12, %v615_v14  ;;  %v1089_v14 = vld [vmem:[%s3351_s3 + $0x90] sm:$0xff] }
 0x14b   : > { %v756_v16 = vpop.f32.mrf.mxu0  ;;  %v776_v17 = vpop.f32.mrf.mxu1  ;;  %v696_v19 = vadd.f32 %v692_v13, %v616_v15  ;;  %v1071_v13 = vld [vmem:[%s3351_s3] sm:$0xff]  ;;  %1136 = vmatpush.msra.mxu3 %v1089_v14 }
 0x14c   : > { %v779_v20 = vadd.f32 %v756_v16, %v695_v18  ;;  %v1088_v16 = vld [vmem:[%s3351_s3 + $0x88] sm:$0xff]  ;;  %v2794_v18 = vld [vmem:[#allocation4] sm:$0xff] }
 0x14d   : > { %v780_v21 = vadd.f32 %v776_v17, %v696_v19  ;;  %1137 = vmatpush.msra.mxu3 %v1088_v16  ;;  %v1087_v17 = vld [vmem:[%s3351_s3 + $0x80] sm:$0xff] }
 0x14f   : > { %1138 = vmatpush.msra.mxu3 %v1087_v17 }
 0x159   : > { %v836_v22 = vpop.f32.mrf.mxu2  ;;  %v856_v23 = vpop.f32.mrf.mxu3 }
 0x15a   : > { %v859_v24 = vadd.f32 %v836_v22, %v779_v20  ;;  %v860_v25 = vadd.f32 %v856_v23, %v780_v21 }
 0x15b   : > { %v918_v26 = vpop.f32.mrf.mxu0  ;;  %v938_v29 = vpop.f32.mrf.mxu1 }
 0x15c   : > { %v941_v30 = vadd.f32 %v918_v26, %v859_v24  ;;  %v942_v31 = vadd.f32 %v938_v29, %v860_v25 }
 0x15e   : > { %v2669_v33 = vmax.f32 %v941_v30, 0.0  ;;  %v2671_v34 = vmax.f32 %v942_v31, 0.0 }
 0x160   : > { %957 = vrot.lane.b32.xlu1 %v2671_v34, %s2315_s10  ;;  %v2216_v35 = vpack.i.bf16 %v2669_v33, %v947_v32  ;;  %v2231_v36 = vpack.i.bf16 %v2671_v34, %v2669_v33 }
 0x162   : > { %2217 = vrot.lane.b32.xlu2 %v2216_v35, %s2316_s11  ;;  %2212 = vrot.lane.b32.xlu0 %v2216_v35, %s2315_s10 }
 0x168   : > { %2222 = vrot.lane.b32.xlu1 %v2216_v35, %s2317_s12 }
 0x16a   : > { %983 = vrot.lane.b32.xlu2 %v2671_v34, %s2317_s12  ;;  %969 = vrot.lane.b32.xlu0 %v2671_v34, %s2316_s11 }
 0x170   : > { %997 = vrot.lane.b32.xlu1 %v2671_v34, %s2318_s13 }
 0x172   : > { %2232 = vrot.lane.b32.xlu2 %v2231_v36, %s2319_s14  ;;  %2227 = vrot.lane.b32.xlu0 %v2216_v35, %s2318_s13 }
 0x178   : > { %2237 = vrot.lane.b32.xlu1 %v2231_v36, %s2320_s15 }
 0x17a   : > { %2247 = vrot.lane.b32.xlu2 %v2231_v36, %s2322_s17  ;;  %2242 = vrot.lane.b32.xlu0 %v2231_v36, %s2321_s16 }
 0x180   : > { %1047 = vrot.lane.b32.xlu1 %v1011_v60, %s2321_s16  ;;  %s2323_s16 = smov 8  }
 0x182   : > { %1061 = vrot.lane.b32.xlu0 %v1011_v60, %s2322_s17  ;;  %v1077_v60 = vld [vmem:[%s3351_s3 + $0x30] sm:$0xff]  ;;  %s2324_s17 = smov 7  }
 0x183   : > { %1112 = vmatpush.msra.mxu2 %v1077_v60 }
 0x185   : > { %1113 = vmatpush.msra.mxu2 %v1076_v63 }
 0x187   : > { %1114 = vmatpush.msra.mxu2 %v1075_v2 }
 0x188   : > { %1168 = vrot.lane.b32.xlu1 %v2794_v18, %s2323_s16 }
 0x189   : > { %1115 = vmatpush.msra.mxu2 %v1074_v5 }
 0x18a   : > { %1267 = vrot.lane.b32.xlu0 %v2794_v18, %s2324_s17 }
 0x18b   : > { %1116 = vmatpush.msra.mxu2 %v1073_v7 }
 0x18d   : > { %1117 = vmatpush.msra.mxu2 %v1072_v10 }
 0x18f   : > { %1118 = vmatpush.msra.mxu2 %v1071_v13 }
 0x1bc   : > { %v2218_v1 = vpop.permute.xlu2 %2217 }
 0x1bd   : > { %v2220_v20 = vunpack.i.h.bf16 %v2218_v1  ;;  %v2219_v24 = vunpack.i.l.bf16 %v2218_v1 }
 0x1bf   : > { %v971_v36 = vsel %vm288_vm10, %v2219_v24, %v2220_v20 }
 0x1c0   : > { %v975_v44 = vsel %vm2460_vm0, %v971_v36, 0.0 }
 0x1c4   : > { %v984_v15 = vpop.permute.xlu2 %983 }
 0x1cc   : > { %v2233_v30 = vpop.permute.xlu2 %2232 }
 0x1cd   : > { %v2235_v45 = vunpack.i.h.bf16 %v2233_v30  ;;  %v2234_v53 = vunpack.i.l.bf16 %v2233_v30 }
 0x1d2   : > { %v958_v9 = vpop.permute.xlu1 %957 }
 0x1d4   : > { %v2213_v12 = vpop.permute.xlu0 %2212  ;;  %v2248_v2 = vpop.permute.xlu2 %2247 }
 0x1d5   : > { %v2215_v21 = vunpack.i.h.bf16 %v2213_v12  ;;  %v2214_v22 = vunpack.i.l.bf16 %v2213_v12  ;;  %v2250_v12 = vunpack.i.h.bf16 %v2248_v2  ;;  %v2249_v13 = vunpack.i.l.bf16 %v2248_v2 }
 0x1d7   : > { %v959_v31 = vsel %vm260_vm5, %v2214_v22, %v2215_v21  ;;  %v960_v32 = vsel %vm260_vm5, %v2215_v21, %v958_v9  ;;  %vm3384_vm5 = vmand %vm2460_vm0, %vm2530_vm13  ;;  %vm3388_vm0 = vcmask 1039360   ;;  %v1063_v22 = vsel %vm883_vm6, %v2249_v13, %v2250_v12 }
 0x1d8   : > { %v963_v39 = vsel %vm3382_vm7, %v959_v31, 0.0  ;;  %v964_v40 = vsel %vm3383_vm8, %v960_v32, 0.0  ;;  %v1021_v1 = vsel %vm3388_vm0, %v2234_v53, %v2235_v45  ;;  %vm3390_vm8 = vcmask 924672  }
 0x1d9   : > { %v977_v54 = vmax.f32 %v963_v39, %v975_v44  ;;  %v1025_v11 = vsel %vm2530_vm13, %v1021_v1, 0.0  ;;  %v2068_v44 = vld [vmem:[%s3350_s2 + $0x20] sm:$0xff]  ;;  %v231_v53 = vand.u32 7, %v2449_v38  ;;  %v2071_v1 = vld [vmem:[%s3350_s2 + $0x38] sm:$0xff] }
 0x1da   : > { %v2223_v19 = vpop.permute.xlu1 %2222 }
 0x1db   : > { %v2225_v25 = vunpack.i.h.bf16 %v2223_v19  ;;  %v2224_v26 = vunpack.i.l.bf16 %v2223_v19 }
 0x1dc   : > { %v970_v23 = vpop.permute.xlu0 %969 }
 0x1dd   : > { %v972_v29 = vsel %vm288_vm10, %v2220_v20, %v970_v23  ;;  %v985_v37 = vsel %vm421_vm11, %v2224_v26, %v2225_v25  ;;  %v986_v42 = vsel %vm421_vm11, %v2225_v25, %v984_v15  ;;  %vm3385_vm10 = vmand %vm2470_vm2, %vm2505_vm9  ;;  %vm3386_vm11 = vcmask 7168  }
 0x1de   : > { %v976_v35 = vsel %vm2470_vm2, %v972_v29, 0.0  ;;  %v989_v50 = vsel %vm3384_vm5, %v985_v37, 0.0  ;;  %v990_v57 = vsel %vm3385_vm10, %v986_v42, 0.0  ;;  %vm3387_vm7 = vmmov %vm3386_vm11  ;;  %v1067_v26 = vsel %vm863_vm4, %v1063_v22, 0.0  ;;  %v1165_v22 = vld [vmem:[%s3350_s2 + $0x18] sm:$0xff] }
 0x1df   : > { %v978_v43 = vmax.f32 %v964_v40, %v976_v35  ;;  %v991_v59 = vmax.f32 %v977_v54, %v989_v50  ;;  %vm3389_vm2 = vmmov %vm3388_vm0  ;;  %vm1172_vm4 = vcmask 64512   ;;  %v2070_v54 = vld [vmem:[%s3350_s2 + $0x30] sm:$0xff]  ;;  %vm2941_vm0 = vcmp.lt.s32.totalorder %v230_v58, 7 }
 0x1e0   : > { %v1022_v5 = vsel %vm3389_vm2, %v2235_v45, %v2750_v62  ;;  %vm3391_vm5 = vmmov %vm3390_vm8  ;;  %v2069_v45 = vld [vmem:[%s3350_s2 + $0x28] sm:$0xff]  ;;  %vm1158_vm2 = vcmask 72704  }
 0x1e1   : > { %v992_v60 = vmax.f32 %v978_v43, %v990_v57  ;;  %vm3392_vm10 = vmand %vm2595_vm12, %vm2464_vm1 }
 0x1e2   : > { %v998_v41 = vpop.permute.xlu1 %997 }
 0x1e4   : > { %v2228_v51 = vpop.permute.xlu0 %2227 }
 0x1e5   : > { %v2230_v55 = vunpack.i.h.bf16 %v2228_v51  ;;  %v2229_v56 = vunpack.i.l.bf16 %v2228_v51 }
 0x1e7   : > { %v1000_v61 = vsel %vm3386_vm11, %v2230_v55, %v998_v41  ;;  %v999_v46 = vsel %vm3387_vm7, %v2229_v56, %v2230_v55  ;;  %vm3393_vm11 = vcmask 916480   ;;  %vm3394_vm7 = vmand %vm2587_vm14, %vm2474_vm3 }
 0x1e8   : > { %v1004_v63 = vsel %vm2474_vm3, %v1000_v61, 0.0  ;;  %v1003_v0 = vsel %vm2464_vm1, %v999_v46, 0.0  ;;  %vm3395_vm1 = vmmov %vm3393_vm11  ;;  %vm1143_vm3 = vcmask 523264   ;;  %v2091_v61 = vld [vmem:[%s3350_s2 + $0x60] sm:$0xff] }
 0x1e9   : > { %v1005_v48 = vmax.f32 %v991_v59, %v1003_v0  ;;  %v1006_v3 = vmax.f32 %v992_v60, %v1004_v63  ;;  %v2082_v60 = vld [vmem:[%s3350_s2 + $0x40] sm:$0xff] }
 0x1ea   : > { %v2238_v6 = vpop.permute.xlu1 %2237 }
 0x1eb   : > { %v1007_v7 = vmax.f32 %v1005_v48, %v2669_v33  ;;  %v2240_v8 = vunpack.i.h.bf16 %v2238_v6  ;;  %v2239_v9 = vunpack.i.l.bf16 %v2238_v6  ;;  %v1008_v10 = vmax.f32 %v1006_v3, %v2671_v34  ;;  %v1893_v48 = vld [vmem:[%s3352_s4] sm:$0xff] }
 0x1ec   : > { %v2243_v14 = vpop.permute.xlu0 %2242  ;;  %v1026_v33 = vsel %vm2505_vm9, %v1022_v5, 0.0  ;;  %vm2909_vm9 = vcmp.lt.s32.totalorder %v231_v53, 7 }
 0x1ed   : > { %v1036_v15 = vsel %vm3390_vm8, %v2240_v8, %v2724_v52  ;;  %v1027_v16 = vmax.f32 %v1007_v7, %v1025_v11  ;;  %v1035_v17 = vsel %vm3391_vm5, %v2239_v9, %v2240_v8  ;;  %v2245_v62 = vunpack.i.h.bf16 %v2243_v14  ;;  %v1162_v7 = vld [vmem:[%s3350_s2] sm:$0xff]  ;;  %v2083_v8 = vld [vmem:[%s3350_s2 + $0x48] sm:$0xff] }
 0x1ee   : > { %v1039_v34 = vsel %vm3392_vm10, %v1035_v17, 0.0  ;;  %v2244_v19 = vunpack.i.l.bf16 %v2243_v14  ;;  %v1028_v21 = vmax.f32 %v1008_v10, %v1026_v33  ;;  %v1040_v23 = vsel %vm3394_vm7, %v1036_v15, 0.0  ;;  %v2092_v10 = vld [vmem:[%s3350_s2 + $0x68] sm:$0xff]  ;;  %v2100_v11 = vld [vmem:[%s3350_s2 + $0x80] sm:$0xff]  ;;  %vm2991_vm10 = vmand %vm2941_vm0, %vm2909_vm9 }
 0x1ef   : > { %v1041_v20 = vmax.f32 %v1027_v16, %v1039_v34  ;;  %v1163_v16 = vld [vmem:[%s3350_s2 + $0x8] sm:$0xff]  ;;  %v2084_v17 = vld [vmem:[%s3350_s2 + $0x50] sm:$0xff] }
 0x1f0   : > { %v1049_v52 = vsel %vm3393_vm11, %v2244_v19, %v2245_v62  ;;  %v1042_v29 = vmax.f32 %v1028_v21, %v1040_v23  ;;  %v2101_v33 = vld [vmem:[%s3350_s2 + $0x88] sm:$0xff]  ;;  %v1164_v34 = vld [vmem:[%s3350_s2 + $0x10] sm:$0xff]  ;;  %v2085_v19 = vld [vmem:[%s3350_s2 + $0x58] sm:$0xff] }
 0x1f1   : > { %v1053_v24 = vsel %vm2595_vm12, %v1049_v52, 0.0  ;;  %vm1271_vm12 = vcmask 56320   ;;  %v2102_v21 = vld [vmem:[%s3350_s2 + $0x90] sm:$0xff]  ;;  %v2117_v52 = vld [vmem:[%s3350_s2 + $0xc0] sm:$0xff] }
 0x1f2   : > { %v1055_v25 = vmax.f32 %v1041_v20, %v1053_v24  ;;  %v1048_v47 = vpop.permute.xlu1 %1047  ;;  %v2094_v20 = vld [vmem:[%s3350_s2 + $0x78] sm:$0xff]  ;;  %v2126_v23 = vld [vmem:[%s3350_s2 + $0xe0] sm:$0xff] }
 0x1f3   : > { %v1050_v30 = vsel %vm3395_vm1, %v2245_v62, %v1048_v47  ;;  %v2093_v62 = vld [vmem:[%s3350_s2 + $0x70] sm:$0xff]  ;;  %v2103_v24 = vld [vmem:[%s3350_s2 + $0x98] sm:$0xff]  ;;  %v2118_v47 = vld [vmem:[%s3350_s2 + $0xc8] sm:$0xff] }
 0x1f4   : > { %v1054_v31 = vsel %vm2587_vm14, %v1050_v30, 0.0  ;;  %v1062_v49 = vpop.permute.xlu0 %1061  ;;  %v1069_v32 = vmax.f32 %v1055_v25, %v1067_v26  ;;  %vm2922_vm14 = vcmp.ge.s32.totalorder %v231_v53, 1  ;;  %v2108_v25 = vld [vmem:[%s3350_s2 + $0xa0] sm:$0xff]  ;;  %v2127_v26 = vld [vmem:[%s3350_s2 + $0xe8] sm:$0xff] }
 0x1f5   : > { %v1056_v35 = vmax.f32 %v1042_v29, %v1054_v31  ;;  %v1064_v36 = vsel %vm883_vm6, %v2250_v12, %v1062_v49  ;;  %vm2890_vm6 = vcmp.ge.s32.totalorder %v230_v58, 1  ;;  %vm2952_vm8 = vmand %vm2941_vm0, %vm2922_vm14  ;;  %v2135_v29 = vld [vmem:[%s3350_s2 + $0x100] sm:$0xff]  ;;  %v2109_v30 = vld [vmem:[%s3350_s2 + $0xa8] sm:$0xff] }
 0x1f6   : > { %v1068_v28 = vsel %vm864_vm15, %v1064_v36, 0.0  ;;  %1119 = vmatmul.f32.vlgmr.msra.gmra.mxu2 %v1069_v32  ;;  %vm2918_vm13 = vmand %vm2890_vm6, %vm2909_vm9  ;;  %vm3404_vm15 = vcmask 7168   ;;  %v2119_v31 = vld [vmem:[%s3350_s2 + $0xd0] sm:$0xff]  ;;  %v2136_v32 = vld [vmem:[%s3350_s2 + $0x108] sm:$0xff] }
 0x1f7   : > { %v1070_v4 = vmax.f32 %v1056_v35, %v1068_v28  ;;  %vm2960_vm5 = vmand %vm2890_vm6, %vm2922_vm14  ;;  %v2128_v49 = vld [vmem:[%s3350_s2 + $0xf0] sm:$0xff]  ;;  %v2120_v36 = vld [vmem:[%s3350_s2 + $0xd8] sm:$0xff] }
 0x1f8   : > { %v2110_v35 = vld [vmem:[%s3350_s2 + $0xb0] sm:$0xff]  ;;  %v2129_v28 = vld [vmem:[%s3350_s2 + $0xf8] sm:$0xff]  ;;  %vm3413_vm11 = vmmov %vm3404_vm15 }
 0x1f9   : > { %1139 = vmatmul.f32.vlgmr.msra.gmra.mxu3 %v1070_v4  ;;  %v2137_v4 = vld [vmem:[%s3350_s2 + $0x110] sm:$0xff]  ;;  %vm3414_vm7 = vmmov %vm3413_vm11 }
 0x1fa   : > { %v1169_v27 = vpop.permute.xlu1 %1168  ;;  %vm3415_vm1 = vmmov %vm3414_vm7 }
 0x1fc   : > { %v1268_v50 = vpop.permute.xlu0 %1267 }
 0x279   : > { %v1120_v37 = vpop.f32.mrf.mxu2 }
 0x27c   : > { %v1140_v39 = vpop.f32.mrf.mxu3 }
 0x27d   : > { %v1141_v40 = vadd.f32 %v1140_v39, %v1120_v37  ;;  %v2111_v37 = vld [vmem:[%s3350_s2 + $0xb8] sm:$0xff] }
 0x27e   : > { %v2138_v39 = vld [vmem:[%s3350_s2 + $0x118] sm:$0xff] }
 0x27f   : > { %1144 = vst.msk [vmem:[#allocation4 + $0x8] sm:$0xff] %vm1143_vm3, %v1141_v40  ;;  %v1675_v40 = vld [vmem:[#allocation5 + $0x48] sm:$0xff] }
 0x286   : > { %v1146_v41 = vld [vmem:[#allocation4 + $0x8] sm:$0xff] }
 0x287   : > { %1329 = vrot.lane.b32.xlu0 %v1146_v41, %s2318_s13  ;;  %1269 = vrot.lane.b32.xlu1 %v1146_v41, %s2324_s17 }
 0x288   : > { %1170 = vrot.lane.b32.xlu2 %v1146_v41, %s2323_s16 }
 0x28f   : > { %1494 = vrot.lane.b32.xlu0 %v1146_v41, %s2325_s8  ;;  %1154 = vrot.lane.b32.xlu1 %v2794_v18, %s2326_s9 }
 0x290   : > { %1327 = vrot.lane.b32.xlu2 %v2794_v18, %s2318_s13 }
 0x297   : > { %1607 = vrot.lane.b32.xlu0 %v1146_v41, %s2327_s23  ;;  %1550 = vrot.lane.b32.xlu1 %v1146_v41, %s2328_s25 }
 0x298   : > { %1156 = vrot.lane.b32.xlu2 %v1146_v41, %s2326_s9 }
 0x29f   : > { %1697 = vrot.lane.b32.xlu1 %v1675_v40, %s2326_s9  ;;  %1725 = vrot.lane.b32.xlu0 %v1675_v40, %s2323_s16 }
 0x2a0   : > { %1436 = vrot.lane.b32.xlu2 %v1146_v41, %s2319_s14 }
 0x2a8   : > { %1757 = vrot.lane.b32.xlu2 %v1675_v40, %s2324_s17 }
 0x2b0   : > { %1789 = vrot.lane.b32.xlu2 %v1675_v40, %s2318_s13 }
 0x2e2   : > { %v1171_v43 = vpop.permute.xlu2 %1170 }
 0x2e3   : > { %v1173_v18 = vsel %vm1172_vm4, %v1169_v27, %v1171_v43 }
 0x2e4   : > { %2072 = vmatpush.msk.msra.mxu0 %vm2890_vm6, %v1173_v18  ;;  %v1671_v18 = vld [vmem:[#allocation5 + $0x18] sm:$0xff] }
 0x2e5   : > { %2073 = vmatmul.msk.f32.vlgmr.msra.gmra.mxu0 %vm1172_vm4, %v2068_v44  ;;  %1717 = vrot.lane.b32.xlu2 %v1671_v18, %s2323_s16 }
 0x2e6   : > { %1416 = vmatpush.msrb.mxu0 %v1146_v41  ;;  %v1673_v41 = vld [vmem:[#allocation5 + $0x30] sm:$0xff] }
 0x2e7   : > { %1693 = vrot.lane.b32.xlu1 %v1673_v41, %s2326_s9  ;;  %1721 = vrot.lane.b32.xlu0 %v1673_v41, %s2323_s16 }
 0x2ea   : > { %v1328_v51 = vpop.permute.xlu2 %1327 }
 0x2ed   : > { %2074 = vmatmul.msk.f32.gmra.mxu0 %vm1172_vm4, %v2069_v45  ;;  %v1669_v45 = vld [vmem:[#allocation5] sm:$0xff]  ;;  %1781 = vrot.lane.b32.xlu2 %v1671_v18, %s2318_s13 }
 0x2ef   : > { %1753 = vrot.lane.b32.xlu1 %v1673_v41, %s2324_s17  ;;  %1689 = vrot.lane.b32.xlu0 %v1671_v18, %s2326_s9 }
 0x2f2   : > { %v1157_v46 = vpop.permute.xlu2 %1156 }
 0x2f5   : > { %2075 = vmatmul.msk.f32.gmra.mxu0 %vm1172_vm4, %v2070_v54 }
 0x2f7   : > { %1785 = vrot.lane.b32.xlu1 %v1673_v41, %s2318_s13  ;;  %1713 = vrot.lane.b32.xlu0 %v1669_v45, %s2323_s16 }
 0x2f9   : > { %v1330_v57 = vpop.permute.xlu0 %1329  ;;  %v1270_v59 = vpop.permute.xlu1 %1269 }
 0x2fa   : > { %v1331_v63 = vsel %vm3404_vm15, %v1328_v51, %v1330_v57  ;;  %v1272_v0 = vsel %vm1271_vm12, %v1268_v50, %v1270_v59  ;;  %v1437_v12 = vpop.permute.xlu2 %1436 }
 0x2fb   : > { %2086 = vmatpush.msk.msrb.mxu2 %vm2918_vm13, %v1272_v0  ;;  %2095 = vmatpush.msk.msrb.mxu3 %vm2922_vm14, %v1331_v63 }
 0x2fc   : > { %2087 = vmatmul.msk.f32.vlgmr.msrb.gmra.mxu2 %vm1172_vm4, %v2082_v60  ;;  %2096 = vmatmul.msk.f32.vlgmr.msrb.gmra.mxu3 %vm1172_vm4, %v2091_v61 }
 0x2fd   : > { %2076 = vmatmul.msk.f32.gmra.mxu0 %vm1172_vm4, %v2071_v1 }
 0x2ff   : > { %1749 = vrot.lane.b32.xlu1 %v1671_v18, %s2324_s17  ;;  %1745 = vrot.lane.b32.xlu0 %v1669_v45, %s2324_s17 }
 0x301   : > { %v1495_v5 = vpop.permute.xlu0 %1494  ;;  %v1155_v6 = vpop.permute.xlu1 %1154 }
 0x302   : > { %v1159_v9 = vsel %vm1158_vm2, %v1155_v6, %v1157_v46  ;;  %2121 = vmatpush.msk.msra.mxu2 %vm2952_vm8, %v1495_v5 }
 0x303   : > { %2077 = vmatpush.msk.msra.mxu1 %vm2960_vm5, %v1159_v9 }
 0x304   : > { %2078 = vmatmul.msk.f32.vlgmr.msra.gmra.mxu1 %vm1172_vm4, %v1162_v7  ;;  %2088 = vmatmul.msk.f32.gmra.mxu2 %vm1172_vm4, %v2083_v8 }
 0x305   : > { %2112 = vmatpush.msk.msrb.mxu1 %vm2909_vm9, %v1437_v12  ;;  %2097 = vmatmul.msk.f32.gmra.mxu3 %vm1172_vm4, %v2092_v10 }
 0x306   : > { %2104 = vmatmul.msk.f32.vlgmr.msrb.gmra.mxu0 %vm1172_vm4, %v2100_v11 }
 0x307   : > { %1685 = vrot.lane.b32.xlu1 %v1669_v45, %s2326_s9 }
 0x309   : > { %v1608_v14 = vpop.permute.xlu0 %1607  ;;  %v1551_v15 = vpop.permute.xlu1 %1550 }
 0x30a   : > { %2130 = vmatpush.msk.msra.mxu3 %vm2941_vm0, %v1551_v15  ;;  %2139 = vmatpush.msk.msra.mxu0 %vm2991_vm10, %v1608_v14 }
 0x30c   : > { %2079 = vmatmul.msk.f32.gmra.mxu1 %vm1172_vm4, %v1163_v16  ;;  %2089 = vmatmul.msk.f32.gmra.mxu2 %vm1172_vm4, %v2084_v17 }
 0x30d   : > { %2098 = vmatmul.msk.f32.gmra.mxu3 %vm1172_vm4, %v2093_v62 }
 0x30e   : > { %2105 = vmatmul.msk.f32.gmra.mxu0 %vm1172_vm4, %v2101_v33 }
 0x30f   : > { %1777 = vrot.lane.b32.xlu1 %v1669_v45, %s2318_s13 }
 0x314   : > { %2080 = vmatmul.msk.f32.gmra.mxu1 %vm1172_vm4, %v1164_v34  ;;  %2090 = vmatmul.msk.f32.gmra.mxu2 %vm1172_vm4, %v2085_v19 }
 0x315   : > { %2099 = vmatmul.msk.f32.gmra.mxu3 %vm1172_vm4, %v2094_v20 }
 0x316   : > { %2106 = vmatmul.msk.f32.gmra.mxu0 %vm1172_vm4, %v2102_v21 }
 0x31c   : > { %2081 = vmatmul.msk.f32.gmra.mxu1 %vm1172_vm4, %v1165_v22  ;;  %2122 = vmatmul.msk.f32.vlgmr.msra.gmra.mxu2 %vm1172_vm4, %v2117_v52 }
 0x31d   : > { %2131 = vmatmul.msk.f32.vlgmr.msra.gmra.mxu3 %vm1172_vm4, %v2126_v23 }
 0x31e   : > { %2107 = vmatmul.msk.f32.gmra.mxu0 %vm1172_vm4, %v2103_v24 }
 0x324   : > { %2113 = vmatmul.msk.f32.vlgmr.msrb.gmra.mxu1 %vm1172_vm4, %v2108_v25  ;;  %2123 = vmatmul.msk.f32.gmra.mxu2 %vm1172_vm4, %v2118_v47 }
 0x325   : > { %2132 = vmatmul.msk.f32.gmra.mxu3 %vm1172_vm4, %v2127_v26 }
 0x326   : > { %2140 = vmatmul.msk.f32.vlgmr.msra.gmra.mxu0 %vm1172_vm4, %v2135_v29 }
 0x32c   : > { %2114 = vmatmul.msk.f32.gmra.mxu1 %vm1172_vm4, %v2109_v30  ;;  %2124 = vmatmul.msk.f32.gmra.mxu2 %vm1172_vm4, %v2119_v31 }
 0x32d   : > { %2133 = vmatmul.msk.f32.gmra.mxu3 %vm1172_vm4, %v2128_v49 }
 0x32e   : > { %2141 = vmatmul.msk.f32.gmra.mxu0 %vm1172_vm4, %v2136_v32 }
 0x334   : > { %2115 = vmatmul.msk.f32.gmra.mxu1 %vm1172_vm4, %v2110_v35  ;;  %2125 = vmatmul.msk.f32.gmra.mxu2 %vm1172_vm4, %v2120_v36 }
 0x335   : > { %2134 = vmatmul.msk.f32.gmra.mxu3 %vm1172_vm4, %v2129_v28 }
 0x336   : > { %2142 = vmatmul.msk.f32.gmra.mxu0 %vm1172_vm4, %v2137_v4 }
 0x33c   : > { %2116 = vmatmul.msk.f32.gmra.mxu1 %vm1172_vm4, %v2111_v37 }
 0x33e   : > { %2143 = vmatmul.msk.f32.gmra.mxu0 %vm1172_vm4, %v2138_v39 }
 0x362   : > { %v1210_v58 = vpop.f32.mrf.mxu0 }
 0x36a   : > { %v1213_v27 = vpop.f32.mrf.mxu0 }
 0x372   : > { %v1216_v43 = vpop.f32.mrf.mxu0 }
 0x37a   : > { %v1219_v44 = vpop.f32.mrf.mxu0 }
 0x37f   : > { %v1309_v50 = vpop.f32.mrf.mxu2  ;;  %v1368_v51 = vpop.f32.mrf.mxu3 }
 0x381   : > { %v1251_v53 = vpop.f32.mrf.mxu1 }
 0x382   : > { %v1252_v5 = vadd.f32 %v1251_v53, %v1210_v58 }
 0x383   : > { %v1418_v54 = vpop.f32.mrf.mxu0 }
 0x384   : > { %v1321_v7 = vadd.f32 %v1309_v50, %v1252_v5 }
 0x386   : > { %v1380_v11 = vadd.f32 %v1368_v51, %v1321_v7 }
 0x387   : > { %v1312_v57 = vpop.f32.mrf.mxu2 }
 0x388   : > { %v1371_v59 = vpop.f32.mrf.mxu3  ;;  %v1430_v15 = vadd.f32 %v1418_v54, %v1380_v11  ;;  %v3175_v11 = vpop.permute.xlu2 %1757 }
 0x389   : > { %v1254_v60 = vpop.f32.mrf.mxu1 }
 0x38a   : > { %v1255_v12 = vadd.f32 %v1254_v60, %v1213_v27 }
 0x38b   : > { %v1421_v61 = vpop.f32.mrf.mxu0 }
 0x38c   : > { %v1322_v16 = vadd.f32 %v1312_v57, %v1255_v12 }
 0x38e   : > { %v1381_v19 = vadd.f32 %v1371_v59, %v1322_v16 }
 0x38f   : > { %v1315_v46 = vpop.f32.mrf.mxu2 }
 0x390   : > { %v1374_v63 = vpop.f32.mrf.mxu3  ;;  %v1431_v23 = vadd.f32 %v1421_v61, %v1381_v19 }
 0x391   : > { %v1257_v0 = vpop.f32.mrf.mxu1 }
 0x392   : > { %v1258_v20 = vadd.f32 %v1257_v0, %v1216_v43 }
 0x393   : > { %v1424_v1 = vpop.f32.mrf.mxu0 }
 0x394   : > { %v1323_v24 = vadd.f32 %v1315_v46, %v1258_v20 }
 0x396   : > { %v1382_v49 = vadd.f32 %v1374_v63, %v1323_v24 }
 0x397   : > { %v1318_v6 = vpop.f32.mrf.mxu2 }
 0x398   : > { %v1377_v8 = vpop.f32.mrf.mxu3  ;;  %v1432_v4 = vadd.f32 %v1424_v1, %v1382_v49 }
 0x399   : > { %v1260_v9 = vpop.f32.mrf.mxu1 }
 0x39a   : > { %v1261_v32 = vadd.f32 %v1260_v9, %v1219_v44 }
 0x39b   : > { %v1427_v10 = vpop.f32.mrf.mxu0 }
 0x39c   : > { %v1324_v37 = vadd.f32 %v1318_v6, %v1261_v32 }
 0x39e   : > { %v1383_v45 = vadd.f32 %v1377_v8, %v1324_v37  ;;  %v3157_v8 = vpop.permute.xlu1 %1697 }
 0x39f   : > { %v1532_v14 = vpop.f32.mrf.mxu2 }
 0x3a0   : > { %v1588_v17 = vpop.f32.mrf.mxu3  ;;  %v1433_v51 = vadd.f32 %v1427_v10, %v1383_v45 }
 0x3a1   : > { %v1474_v62 = vpop.f32.mrf.mxu1 }
 0x3a2   : > { %v1486_v33 = vadd.f32 %v1474_v62, %v1430_v15 }
 0x3a3   : > { %v1645_v34 = vpop.f32.mrf.mxu0 }
 0x3a4   : > { %v1544_v21 = vadd.f32 %v1532_v14, %v1486_v33  ;;  %v3185_v14 = vpop.permute.xlu2 %1789 }
 0x3a6   : > { %v1600_v22 = vadd.f32 %v1588_v17, %v1544_v21  ;;  %v3167_v10 = vpop.permute.xlu1 %1693  ;;  %v1726_v17 = vpop.permute.xlu0 %1725 }
 0x3a7   : > { %v1535_v52 = vpop.f32.mrf.mxu2 }
 0x3a8   : > { %v1657_v25 = vadd.f32 %v1645_v34, %v1600_v22  ;;  %v1591_v47 = vpop.f32.mrf.mxu3 }
 0x3a9   : > { %v1477_v26 = vpop.f32.mrf.mxu1 }
 0x3aa   : > { %v1661_v29 = vmax.f32 %v1657_v25, 0.0  ;;  %v1487_v30 = vadd.f32 %v1477_v26, %v1431_v23 }
 0x3ab   : > { %v1648_v31 = vpop.f32.mrf.mxu0 }
 0x3ac   : > { %1665 = vst.msk [vmem:[#allocation5 + $0x8] sm:$0xff] %vm1143_vm3, %v1661_v29  ;;  %v1545_v35 = vadd.f32 %v1535_v52, %v1487_v30  ;;  %v1718_v16 = vpop.permute.xlu2 %1717 }
 0x3ae   : > { %v1601_v36 = vadd.f32 %v1591_v47, %v1545_v35  ;;  %v3181_v12 = vpop.permute.xlu1 %1753  ;;  %v1722_v34 = vpop.permute.xlu0 %1721 }
 0x3af   : > { %v1538_v28 = vpop.f32.mrf.mxu2 }
 0x3b0   : > { %v1658_v39 = vadd.f32 %v1648_v31, %v1601_v36  ;;  %v1594_v41 = vpop.f32.mrf.mxu3 }
 0x3b1   : > { %v1480_v40 = vpop.f32.mrf.mxu1 }
 0x3b2   : > { %v1662_v58 = vmax.f32 %v1658_v39, 0.0  ;;  %v1488_v27 = vadd.f32 %v1480_v40, %v1432_v4 }
 0x3b3   : > { %v3120_v43 = vld [vmem:[#allocation5 + $0x8] sm:$0xff]  ;;  %v1651_v18 = vpop.f32.mrf.mxu0 }
 0x3b4   : > { %1666 = vst.msk [vmem:[#allocation5 + $0x20] sm:$0xff] %vm1143_vm3, %v1662_v58  ;;  %v1546_v50 = vadd.f32 %v1538_v28, %v1488_v27  ;;  %1715 = vrot.lane.b32.xlu1 %v3120_v43, %s2323_s16  ;;  %1687 = vrot.lane.b32.xlu2 %v3120_v43, %s2326_s9  ;;  %v1782_v33 = vpop.permute.xlu2 %1781 }
 0x3b6   : > { %v1602_v44 = vadd.f32 %v1594_v41, %v1546_v50  ;;  %v3193_v15 = vpop.permute.xlu1 %1785  ;;  %v1690_v22 = vpop.permute.xlu0 %1689 }
 0x3b7   : > { %v1541_v57 = vpop.f32.mrf.mxu2 }
 0x3b8   : > { %v1659_v53 = vadd.f32 %v1651_v18, %v1602_v44  ;;  %v1597_v46 = vpop.f32.mrf.mxu3 }
 0x3b9   : > { %v1483_v54 = vpop.f32.mrf.mxu1 }
 0x3ba   : > { %v1663_v59 = vmax.f32 %v1659_v53, 0.0  ;;  %v1489_v60 = vadd.f32 %v1483_v54, %v1433_v51 }
 0x3bb   : > { %v3127_v61 = vld [vmem:[#allocation5 + $0x20] sm:$0xff]  ;;  %v1654_v0 = vpop.f32.mrf.mxu0 }
 0x3bc   : > { %1667 = vst.msk [vmem:[#allocation5 + $0x38] sm:$0xff] %vm1143_vm3, %v1663_v59  ;;  %v1547_v63 = vadd.f32 %v1541_v57, %v1489_v60  ;;  %1747 = vrot.lane.b32.xlu1 %v3120_v43, %s2324_s17  ;;  %1779 = vrot.lane.b32.xlu2 %v3120_v43, %s2318_s13 }
 0x3bd   : > { %1719 = vrot.lane.b32.xlu0 %v3127_v61, %s2323_s16 }
 0x3be   : > { %v1603_v1 = vadd.f32 %v1597_v46, %v1547_v63  ;;  %v1750_v62 = vpop.permute.xlu1 %1749  ;;  %v1714_v25 = vpop.permute.xlu0 %1713 }
 0x3c0   : > { %v1660_v5 = vadd.f32 %v1654_v0, %v1603_v1 }
 0x3c2   : > { %v1664_v6 = vmax.f32 %v1660_v5, 0.0 }
 0x3c3   : > { %v3143_v7 = vld [vmem:[#allocation5 + $0x38] sm:$0xff] }
 0x3c4   : > { %1668 = vst.msk [vmem:[#allocation5 + $0x50] sm:$0xff] %vm1143_vm3, %v1664_v6  ;;  %1751 = vrot.lane.b32.xlu2 %v3127_v61, %s2324_s17  ;;  %1691 = vrot.lane.b32.xlu1 %v3127_v61, %s2326_s9 }
 0x3c5   : > { %1783 = vrot.lane.b32.xlu0 %v3127_v61, %s2318_s13 }
 0x3c6   : > { %v1686_v19 = vpop.permute.xlu1 %1685  ;;  %v1746_v26 = vpop.permute.xlu0 %1745 }
 0x3cb   : > { %v3159_v9 = vld [vmem:[#allocation5 + $0x50] sm:$0xff] }
 0x3cc   : > { %1723 = vrot.lane.b32.xlu1 %v3143_v7, %s2323_s16  ;;  %1695 = vrot.lane.b32.xlu2 %v3143_v7, %s2326_s9 }
 0x3cd   : > { %1815 = vrot.lane.b32.xlu0 %v3127_v61, %s2319_s14 }
 0x3ce   : > { %v1778_v52 = vpop.permute.xlu1 %1777 }
 0x3d4   : > { %1817 = vrot.lane.b32.xlu1 %v3143_v7, %s2319_s14  ;;  %1755 = vrot.lane.b32.xlu2 %v3143_v7, %s2324_s17 }
 0x3d5   : > { %1877 = vrot.lane.b32.xlu0 %v3143_v7, %s2327_s23 }
 0x3dc   : > { %1787 = vrot.lane.b32.xlu2 %v3143_v7, %s2318_s13  ;;  %1727 = vrot.lane.b32.xlu1 %v3159_v9, %s2323_s16 }
 0x3dd   : > { %1759 = vrot.lane.b32.xlu0 %v3159_v9, %s2324_s17  ;;  %s2271_s17 = scalar_lea.hbm %s3353_s5, 32 }
 0x3e4   : > { %1837 = vrot.lane.b32.xlu2 %v3143_v7, %s2325_s8  ;;  %1857 = vrot.lane.b32.xlu1 %v3143_v7, %s2328_s25 }
 0x3e5   : > { %1791 = vrot.lane.b32.xlu0 %v3159_v9, %s2318_s13 }
 0x3ec   : > { %1813 = vrot.lane.b32.xlu1 %v3120_v43, %s2319_s14  ;;  %1699 = vrot.lane.b32.xlu2 %v3159_v9, %s2326_s9  ;;  %s215_s9 = sand.u32 1, %s2305_s19  }
 0x3ed   : > { %1819 = vrot.lane.b32.xlu0 %v3159_v9, %s2319_s14  ;;  %s1940_s6 = scalar_lea.sflag [#allocation7], %s215_s9 }
 0x3f4   : > { %1875 = vrot.lane.b32.xlu1 %v3127_v61, %s2327_s23  ;;  %1835 = vrot.lane.b32.xlu2 %v3127_v61, %s2325_s8 }
 0x3f5   : > { %1839 = vrot.lane.b32.xlu0 %v3159_v9, %s2325_s8 }
 0x3fc   : > { %1859 = vrot.lane.b32.xlu2 %v3159_v9, %s2328_s25 }
 0x3fd   : > { %1879 = vrot.lane.b32.xlu0 %v3159_v9, %s2327_s23 }
 0x404   : > { %1855 = vrot.lane.b32.xlu2 %v3127_v61, %s2328_s25 }
 0x405   : > { %1833 = vrot.lane.b32.xlu0 %v3120_v43, %s2325_s8 }
 0x40c   : > { %1853 = vrot.lane.b32.xlu2 %v3120_v43, %s2328_s25  ;;  %s2156_s25 = sshll.u32 %s2381_s22, 4 }
 0x40d   : > { %1873 = vrot.lane.b32.xlu0 %v3120_v43, %s2327_s23  ;;  %s2021_s23 = sshll.u32 %s215_s9, 4  ;;  %s1951_s26 = scalar_lea.hbm %s3353_s5, %s2156_s25 }
 0x40e   : > { %v1688_v20 = vpop.permute.xlu2 %1687  ;;  %s217_s10 = scalar_lea.vmem [#allocation6], %s2021_s23  ;;  %s1954_s15 = sshll.u32 %s1951_s26, 4  ;;  %s1955_s15 = int_to_ptr.hbm [resolvable:$true] %s1954_s15 }
 0x40f   : > { %v1701_v21 = vsel %vm1158_vm2, %v1686_v19, %v1688_v20  ;;  %s1952_s30 = sshll.u32 %s217_s10, 4  ;;  %s2265_s7 = sshra.s32 %s1955_s15, 4  ;;  %s1953_s30 = int_to_ptr.vmem [resolvable:$true] %s1952_s30  ;;  %s2266_s7 = int_to_ptr.hbm [resolvable:$true] %s2265_s7 }
 0x410   : > { %v1709_v31 = vsel %vm2960_vm5, %v1701_v21, 0.0  ;;  %s2267_s13 = scalar_lea.hbm %s2266_s7, 16  ;;  %p2272_p0 = scmp.lt.s32.totalorder %s2266_s7, %s3353_s5 }
 0x411   : > { %p2268_p11 = scmp.ne.s32.totalorder %s2266_s7, %s2267_s13  ;;  %p2273_p1 = scmp.lt.s32.totalorder %s2271_s17, %s2267_s13 }
 0x413   : > { %p2269_p12 = pnand %p2268_p11, %p2398_p5  ;;  %p2274_p2 = por %p2273_p1, %p2272_p0 }
 0x415   : > { %p2270_p13 = pneg %p2269_p12 }
 0x416   : > { %v1780_v23 = vpop.permute.xlu2 %1779 }
 0x417   : > { %v1793_v24 = vsel %vm3413_vm11, %v1778_v52, %v1780_v23  ;;  %p2275_p3 = pnand %p2274_p2, %p2270_p13 }
 0x418   : > { %v1801_v40 = vsel %vm2922_vm14, %v1793_v24, 0.0 }
 0x41e   : > { %v1752_v47 = vpop.permute.xlu2 %1751 }
 0x41f   : > { %v1762_v45 = vsel %vm1271_vm12, %v1750_v62, %v1752_v47 }
 0x420   : > { %v1770_v59 = vsel %vm2918_vm13, %v1762_v45, 0.0 }
 0x426   : > { %v1716_v29 = vpop.permute.xlu1 %1715  ;;  %v1696_v35 = vpop.permute.xlu2 %1695 }
 0x427   : > { %v1729_v30 = vsel %vm1172_vm4, %v1714_v25, %v1716_v29 }
 0x428   : > { %v1737_v49 = vsel %vm2890_vm6, %v1729_v30, 0.0 }
 0x429   : > { %v1741_v32 = vmax.f32 %v1709_v31, %v1737_v49 }
 0x42e   : > { %v1748_v36 = vpop.permute.xlu1 %1747  ;;  %v1756_v27 = vpop.permute.xlu2 %1755 }
 0x42f   : > { %v1761_v28 = vsel %vm1271_vm12, %v1746_v26, %v1748_v36  ;;  %v1720_v4 = vpop.permute.xlu0 %1719 }
 0x430   : > { %v1769_v37 = vsel %vm2918_vm13, %v1761_v28, 0.0  ;;  %v1730_v58 = vsel %vm1172_vm4, %v1718_v16, %v1720_v4 }
 0x431   : > { %v1773_v39 = vmax.f32 %v1741_v32, %v1769_v37  ;;  %v1738_v51 = vsel %vm2890_vm6, %v1730_v58, 0.0 }
 0x433   : > { %v3219_v41 = vmax.f32 %v1773_v39, %v1801_v40 }
 0x436   : > { %v1692_v18 = vpop.permute.xlu1 %1691  ;;  %v1788_v0 = vpop.permute.xlu2 %1787 }
 0x437   : > { %v1784_v50 = vpop.permute.xlu0 %1783  ;;  %v1702_v44 = vsel %vm1158_vm2, %v1690_v22, %v1692_v18  ;;  %v1703_v22 = vsel %vm1158_vm2, %v3167_v10, %v1696_v35 }
 0x438   : > { %v1710_v53 = vsel %vm2960_vm5, %v1702_v44, 0.0  ;;  %v1794_v54 = vsel %vm3414_vm7, %v1782_v33, %v1784_v50  ;;  %v1711_v47 = vsel %vm2960_vm5, %v1703_v22, 0.0  ;;  %v1809_v22 = vmax.f32 %v3219_v41, %v3120_v43 }
 0x439   : > { %v1742_v57 = vmax.f32 %v1710_v53, %v1738_v51  ;;  %v1802_v46 = vsel %vm2922_vm14, %v1794_v54, 0.0 }
 0x43b   : > { %v1774_v60 = vmax.f32 %v1742_v57, %v1770_v59 }
 0x43d   : > { %v1806_v63 = vmax.f32 %v1774_v60, %v1802_v46 }
 0x43e   : > { %v1724_v5 = vpop.permute.xlu1 %1723  ;;  %v1838_v16 = vpop.permute.xlu2 %1837 }
 0x43f   : > { %v1816_v1 = vpop.permute.xlu0 %1815  ;;  %v1731_v33 = vsel %vm1172_vm4, %v1722_v34, %v1724_v5  ;;  %v1763_v34 = vsel %vm1271_vm12, %v3181_v12, %v1756_v27  ;;  %v1847_v44 = vsel %vm2952_vm8, %v1838_v16, 0.0  ;;  %v1810_v51 = vmax.f32 %v1806_v63, %v3127_v61 }
 0x440   : > { %v1739_v24 = vsel %vm2890_vm6, %v1731_v33, 0.0  ;;  %v1771_v49 = vsel %vm2918_vm13, %v1763_v34, 0.0  ;;  %v1826_v59 = vsel %vm2909_vm9, %v1816_v1, 0.0 }
 0x441   : > { %v1743_v29 = vmax.f32 %v1711_v47, %v1739_v24 }
 0x443   : > { %v1775_v32 = vmax.f32 %v1743_v29, %v1771_v49 }
 0x446   : > { %v1818_v62 = vpop.permute.xlu1 %1817  ;;  %v1700_v20 = vpop.permute.xlu2 %1699 }
 0x447   : > { %v3233_v6 = vpop.permute.xlu0 %1877  ;;  %v1704_v25 = vsel %vm1158_vm2, %v3157_v8, %v1700_v20  ;;  %v1827_v56 = vsel %vm2909_vm9, %v1818_v62, 0.0  ;;  %v1830_v62 = vmax.f32 %v1810_v51, %v1826_v59 }
 0x448   : > { %v1712_v10 = vsel %vm2960_vm5, %v1704_v25, 0.0  ;;  %v1887_v61 = vsel %vm2991_vm10, %v3233_v6, 0.0 }
 0x44e   : > { %v1728_v21 = vpop.permute.xlu1 %1727  ;;  %v1836_v31 = vpop.permute.xlu2 %1835 }
 0x44f   : > { %v1760_v19 = vpop.permute.xlu0 %1759  ;;  %v1732_v52 = vsel %vm1172_vm4, %v1726_v17, %v1728_v21  ;;  %vm3416_vm4 = vmmov %vm3415_vm1  ;;  %v1846_v16 = vsel %vm2952_vm8, %v1836_v31, 0.0 }
 0x450   : > { %v1740_v26 = vsel %vm2890_vm6, %v1732_v52, 0.0  ;;  %v1764_v17 = vsel %vm1271_vm12, %v3175_v11, %v1760_v19  ;;  %v1795_v42 = vsel %vm3416_vm4, %v3193_v15, %v1788_v0  ;;  %v1850_v1 = vmax.f32 %v1830_v62, %v1846_v16 }
 0x451   : > { %v1744_v30 = vmax.f32 %v1712_v10, %v1740_v26  ;;  %v1772_v3 = vsel %vm2918_vm13, %v1764_v17, 0.0  ;;  %v1803_v28 = vsel %vm2922_vm14, %v1795_v42, 0.0  ;;  %v1894_v10 = vld [vmem:[%s3352_s4 + $0x8] sm:$0xff]  ;;  %vm1936_vm6 = vcmask 261120  }
 0x453   : > { %v1776_v36 = vmax.f32 %v1744_v30, %v1772_v3 }
 0x456   : > { %v1858_v12 = vpop.permute.xlu1 %1857  ;;  %v1860_v39 = vpop.permute.xlu2 %1859 }
 0x457   : > { %v1792_v23 = vpop.permute.xlu0 %1791 }
 0x458   : > { %v1796_v8 = vsel %vm3415_vm1, %v3185_v14, %v1792_v23  ;;  %v1807_v14 = vmax.f32 %v1775_v32, %v1803_v28 }
 0x459   : > { %v1804_v11 = vsel %vm2922_vm14, %v1796_v8, 0.0 }
 0x45a   : > { %v1808_v4 = vmax.f32 %v1776_v36, %v1804_v11  ;;  %v1811_v15 = vmax.f32 %v1807_v14, %v3143_v7  ;;  %v1867_v7 = vsel %vm2941_vm0, %v1858_v12, 0.0 }
 0x45c   : > { %v1812_v40 = vmax.f32 %v1808_v4, %v3159_v9  ;;  %v1831_v45 = vmax.f32 %v1811_v15, %v1827_v56  ;;  %v1868_v9 = vsel %vm2941_vm0, %v1860_v39, 0.0 }
 0x45e   : > { %v1814_v38 = vpop.permute.xlu1 %1813  ;;  %v1851_v53 = vmax.f32 %v1831_v45, %v1847_v44  ;;  %v1856_v0 = vpop.permute.xlu2 %1855 }
 0x45f   : > { %v1820_v35 = vpop.permute.xlu0 %1819  ;;  %v1866_v63 = vsel %vm2941_vm0, %v1856_v0, 0.0  ;;  %v1825_v21 = vsel %vm2909_vm9, %v1814_v38, 0.0 }
 0x460   : > { %v1828_v37 = vsel %vm2909_vm9, %v1820_v35, 0.0  ;;  %v1871_v46 = vmax.f32 %v1851_v53, %v1867_v7  ;;  %v1870_v52 = vmax.f32 %v1850_v1, %v1866_v63  ;;  %v1829_v24 = vmax.f32 %v1809_v22, %v1825_v21 }
 0x461   : > { %v1832_v18 = vmax.f32 %v1812_v40, %v1828_v37 }
 0x462   : > { %v1891_v20 = vmax.f32 %v1871_v46, %v1887_v61 }
 0x466   : > { %v1876_v19 = vpop.permute.xlu1 %1875  ;;  %v1854_v47 = vpop.permute.xlu2 %1853 }
 0x467   : > { %v1840_v58 = vpop.permute.xlu0 %1839  ;;  %v1886_v33 = vsel %vm2991_vm10, %v1876_v19, 0.0  ;;  %v1865_v26 = vsel %vm2941_vm0, %v1854_v47, 0.0 }
 0x468   : > { %v1848_v27 = vsel %vm2952_vm8, %v1840_v58, 0.0  ;;  %v1890_v25 = vmax.f32 %v1870_v52, %v1886_v33 }
 0x469   : > { %v1852_v50 = vmax.f32 %v1832_v18, %v1848_v27 }
 0x46b   : > { %v1872_v57 = vmax.f32 %v1852_v50, %v1868_v9 }
 0x46f   : > { %v1880_v54 = vpop.permute.xlu0 %1879 }
 0x470   : > { %v1888_v60 = vsel %vm2991_vm10, %v1880_v54, 0.0 }
 0x471   : > { %v1892_v5 = vmax.f32 %v1872_v57, %v1888_v60 }
 0x473   : > { %2144 = vmatpush.xpose.msk.msra.mxu1 %vm1143_vm3, %v1892_v5 }
 0x477   : > { %v1834_v23 = vpop.permute.xlu0 %1833  ;;  %2145 = vmatpush.xpose.msk.msra.mxu1 %vm1143_vm3, %v1891_v20 }
 0x478   : > { %v1845_v6 = vsel %vm2952_vm8, %v1834_v23, 0.0 }
 0x479   : > { %v1849_v55 = vmax.f32 %v1829_v24, %v1845_v6 }
 0x47b   : > { %2146 = vmatpush.xpose.msk.msra.mxu1 %vm1143_vm3, %v1890_v25  ;;  %v1869_v43 = vmax.f32 %v1849_v55, %v1865_v26 }
 0x47f   : > { %v1874_v34 = vpop.permute.xlu0 %1873 }
 0x480   : > { %v1885_v41 = vsel %vm2991_vm10, %v1874_v34, 0.0 }
 0x481   : > { %v1889_v29 = vmax.f32 %v1869_v43, %v1885_v41 }
 0x483   : > { %2147 = vmatpush.xpose.msk.msra.mxu1 %vm1143_vm3, %v1889_v29 }
 0x486   : > { %2148 = vmatmul.msk.f32.vlgmr.msra.gmra.mxu1 %vm1143_vm3, %v1893_v48 }
 0x48e   : > { %2149 = vmatmul.msk.f32.gmra.mxu1 %vm1143_vm3, %v1894_v10 }
 0x503   : > { %v1930_v2 = vpop.f32.mrf.mxu1 }
 0x504   : > { %1937 = vst.msk [vmem:[%s217_s10] sm:$0xff] %vm1936_vm6, %v1930_v2 }
 0x50b   : > { %v1933_v13 = vpop.f32.mrf.mxu1 }
 0x50c   : > { %1938 = vst.msk [vmem:[%s217_s10 + $0x8] sm:$0xff] %vm1936_vm6, %v1933_v13 }
 0x50d   : > { %2278 = shalt.err (!%p2275_p3)
}
 0x50e   : > { %s2329_s9 = smov 128  }
 0x50f   : > { %2157 = dma.vmem_to_hbm [thread:$0]  (%p2398_p5), %s1953_s30, 256, %s1955_s15, %s1940_s6, %s2329_s9, %s2329_s9, %s2323_s16  }
 0x510 PF: > { %p2163_p4 = scmp.ge.s32.totalorder %s2313_s21, 2  ;;  %s1969_s25 = sand.u32 1, %s2301_s18  }
 0x511   : > { %s1970_s10 = scalar_lea.sflag [#allocation7], %s1969_s25 }
 0x512   : > { %p2160_p7 = pnand %p2163_p4, %p2402_p6 }
 0x514   : > { %p2161_p8 = pneg %p2160_p7 }
 0x516   : > { %2296 = dma.done.wait (%p2161_p8), %s1970_s10, 256  }
 0x517   : > { %2298 = vsyncadd (%p2161_p8), %s1970_s10, 4294967040  ;;  %p15_p9 = scmp.ge.s32.totalorder %s2385_s24, 4   ;;  %s3417_s18 = smov %s2305_s19 }
 0x518   : > { %s3418_s19 = smov %s2309_s20  ;;  %s3419_s20 = smov %s2396_s27 }
 0x519   : > { %s3420_s21 = smov %s2385_s24  ;;  %17 = sbr.rel (!%p15_p9) target bundleno = 3 (0x3), region = 99 }
 0x51e   :  { %1976 = vsyncpa [#allocation7], 1 }
 0x51f   :  { %1978 = vsyncpa [#allocation7 + $0x1], 1 }

</bundles_post_ra>
